<compile_context>
chip_gen: v7x
topology: tpu7x:2x2x1
jax: 0.10.0
libtpu: 0.0.40
codegen_flags: <defaults>
</compile_context>

<pallas_src>
import functools

import jax
import jax.numpy as jnp
from jax import lax
from jax.experimental import pallas as pl
from jax.experimental.pallas import tpu as pltpu

RK_WEIGHTS = {
    "rk4": (1.0 / 6.0, 1.0 / 3.0, 1.0 / 3.0, 1.0 / 6.0),
    "rk2": (1.0 / 2.0, 1.0 / 2.0),
}


def _rk_kernel(x_ref, w_ref, b_ref, o_ref, *, dt_weights, num_steps):
    W = w_ref[...]  # [D, D] in the matmul dtype (bf16 recommended; f32 supported)
    # Hoist the [1,D] -> [tb,D] bias broadcast out of the stage/step loops
    # (JAX does not CSE broadcast_in_dim; it would otherwise be re-emitted
    # 4*num_steps times per tile).
    b_full = jnp.broadcast_to(b_ref[...].astype(jnp.float32), x_ref.shape)

    def f(v_f32):
        # dynamics net f(v) = tanh(v @ W + b):
        # MXU matmul in W.dtype with f32 accumulation, bias add + tanh in f32.
        return jnp.tanh(
            jnp.dot(v_f32.astype(W.dtype), W, preferred_element_type=jnp.float32)
            + b_full
        )

    def rk_step(state):
        # Running weighted sum S = dt * sum_{j<i} w_j k_j, so stage i is
        # evaluated at state + S — identical to the PyTorch module's loop
        # (final weights used as stage coefficients); final = state + S.
        S = jnp.zeros_like(state)
        for dw in dt_weights:  # dt already folded into each weight
            k = f(state + S)
            S = S + dw * k
        return state + S

    state = x_ref[...].astype(jnp.float32)
    if num_steps <= 4:
        # Python unroll: gives the scheduler cross-step visibility.
        for _ in range(num_steps):
            state = rk_step(state)
    else:
        state = lax.fori_loop(0, num_steps, lambda t, s: rk_step(s), state)
    o_ref[...] = state.astype(o_ref.dtype)


def _choose_batch_tile(batch, requested):
    """Largest multiple-of-8 divisor of `batch` that is <= `requested`,
    preferring tiles that leave >= 2 grid steps (so the batch axis can shard
    across both TensorCores on v7x and the pipeline has work to overlap)."""
    if batch % 8 != 0:
        return batch  # block dim must be a multiple of 8 or the full extent
    divisors = [t for t in range(8, batch + 1, 8) if batch % t == 0]
    multi_tile = [t for t in divisors if t <= requested and batch // t >= 2]
    if multi_tile:
        return max(multi_tile)
    single = [t for t in divisors if t <= requested]
    if single:
        return max(single)
    return batch


def rk_integrate(x, W, b, *, dt, method="rk4", num_steps=1, tb=512,
                 matmul_dtype=jnp.bfloat16):
    """Pallas-fused RKIntegrator(dt, method) applied `num_steps` times with
    dynamics f(v) = tanh(v @ W + b).

    W is cast to `matmul_dtype` (bf16 by default: the MXU is bf16-native on
    v5e/v6e/v7x; accumulation stays f32).  Pass matmul_dtype=jnp.float32 for a
    bit-faithful f32 matmul at ~3x the MXU cost."""
    if method not in RK_WEIGHTS:
        raise ValueError("Invalid method")
    dt_weights = tuple(float(dt) * float(w) for w in RK_WEIGHTS[method])

    B, D = x.shape
    assert W.shape == (D, D) and b.shape == (1, D)

    # Pad the state dim to a lane-dense multiple of 128 so the output store is
    # an unmasked vst.  Zero-padded W rows/columns keep padded state columns
    # identically zero, so the real columns are unaffected.
    Dp = ((D + 127) // 128) * 128
    if Dp != D:
        x = jnp.pad(x, ((0, 0), (0, Dp - D)))
        W = jnp.pad(W, ((0, Dp - D), (0, Dp - D)))
        b = jnp.pad(b, ((0, 0), (0, Dp - D)))
    W_m = W.astype(matmul_dtype)

    tb = _choose_batch_tile(B, min(int(tb), B))

    kernel = functools.partial(
        _rk_kernel, dt_weights=dt_weights, num_steps=int(num_steps))

    # Explicit scoped-VMEM budget: x/out double buffers + W/b (counted at 2
    # buffers to cover the non-single-buffer fallback) + f32 compute
    # temporaries, clamped to this chip's physical VMEM (64 MiB on v7x).
    est = (2 * 2 * tb * Dp * jnp.dtype(x.dtype).itemsize          # x + out
           + 2 * Dp * Dp * jnp.dtype(matmul_dtype).itemsize       # W
           + 2 * 2 * Dp * jnp.dtype(b.dtype).itemsize             # b
           + 6 * tb * Dp * 4)                                     # f32 temporaries
    try:
        vmem_cap = int(pltpu.get_tpu_info().vmem_capacity_bytes)
    except Exception:
        vmem_cap = 64 << 20  # conservative: v7x has 64 MiB per TensorCore
    vmem_limit = int(min(vmem_cap, max(32 << 20, est + (8 << 20))))

    def build(single_buffer_resident):
        def resident(shape):
            # W and b are grid-invariant: keep a single VMEM copy instead of a
            # double buffer (decisive for large D on v7x / v5e scoped VMEM).
            if single_buffer_resident:
                return pl.BlockSpec(shape, lambda i: (0,) * len(shape),
                                    pipeline_mode=pl.Buffered(1))
            return pl.BlockSpec(shape, lambda i: (0,) * len(shape))

        return pl.pallas_call(
            kernel,
            out_shape=jax.ShapeDtypeStruct((B, Dp), x.dtype),
            grid=(B // tb,),
            in_specs=[
                pl.BlockSpec((tb, Dp), lambda i: (i, 0)),  # x: tiled over batch
                resident((Dp, Dp)),                        # W: VMEM-resident
                resident((1, Dp)),                         # b: VMEM-resident
            ],
            out_specs=pl.BlockSpec((tb, Dp), lambda i: (i, 0)),
            compiler_params=pltpu.CompilerParams(
                dimension_semantics=("parallel",),   # megacore sharding on v7x
                vmem_limit_bytes=vmem_limit,
            ),
        )

    try:
        out = build(single_buffer_resident=True)(x, W_m, b)
    except Exception:
        # Fallback if this JAX build rejects Buffered(1) single-buffering.
        out = build(single_buffer_resident=False)(x, W_m, b)

    return out if Dp == D else out[:, :D]


def _reference(x, W, b, *, dt, method="rk4", num_steps=1,
               matmul_dtype=jnp.float32):
    """Pure-JAX reference, loop structure faithful to the PyTorch module.
    `matmul_dtype` mirrors the kernel's MXU operand dtype."""
    weights = RK_WEIGHTS[method]
    nk = len(weights)
    Wm = W.astype(matmul_dtype)
    bf = b.astype(jnp.float32)

    def f(v):
        return jnp.tanh(
            jnp.dot(v.astype(matmul_dtype), Wm,
                    preferred_element_type=jnp.float32) + bf)

    def one_step(xs):
        k = [f(xs)]
        for i in range(1, nk):
            x_i = xs
            for j in range(i):
                x_i = x_i + dt * weights[j] * k[j]
            k.append(f(x_i))
        return xs + dt * sum(weights[i] * k[i] for i in range(nk))

    out = x.astype(jnp.float32)
    for _ in range(int(num_steps)):
        out = one_step(out)
    return out.astype(x.dtype)


if __name__ == "__main__":
    key = jax.random.PRNGKey(0)
    kx, kw, kb = jax.random.split(key, 3)

    B, D = 256, 128          # state batch x state dim (2 batch tiles of 128)
    dt = 0.01

    x = jax.random.normal(kx, (B, D), dtype=jnp.float32)
    W = jax.random.normal(kw, (D, D), dtype=jnp.float32) * (1.0 / jnp.sqrt(D))
    b = jax.random.normal(kb, (1, D), dtype=jnp.float32) * 0.1

    # --- default bf16-MXU path: single RK4 step = the module's forward() ---
    out4 = jax.block_until_ready(rk_integrate(x, W, b, dt=dt, method="rk4"))
    ref4 = _reference(x, W, b, dt=dt, method="rk4", matmul_dtype=jnp.bfloat16)
    assert out4.shape == (B, D) and out4.dtype == jnp.float32
    assert jnp.allclose(out4, ref4, atol=5e-4, rtol=5e-4), "rk4 bf16 mismatch"
    ref4_f32 = _reference(x, W, b, dt=dt, method="rk4", matmul_dtype=jnp.float32)
    assert jnp.allclose(out4, ref4_f32, atol=5e-3, rtol=5e-3), "rk4 vs f32 ref"

    # --- exact-f32 path (dtype-dependent tight tolerance) ---
    out4f = jax.block_until_ready(
        rk_integrate(x, W, b, dt=dt, method="rk4", matmul_dtype=jnp.float32))
    assert jnp.allclose(out4f, ref4_f32, atol=1e-5, rtol=1e-5), "rk4 f32 mismatch"

    # --- rk2 ---
    out2 = jax.block_until_ready(rk_integrate(x, W, b, dt=dt, method="rk2"))
    ref2 = _reference(x, W, b, dt=dt, method="rk2", matmul_dtype=jnp.bfloat16)
    assert jnp.allclose(out2, ref2, atol=5e-4, rtol=5e-4), "rk2 mismatch"

    # --- fused multi-step, unrolled path (num_steps <= 4) ---
    out3 = jax.block_until_ready(
        rk_integrate(x, W, b, dt=dt, method="rk4", num_steps=3))
    ref3 = _reference(x, W, b, dt=dt, method="rk4", num_steps=3,
                      matmul_dtype=jnp.bfloat16)
    assert jnp.allclose(out3, ref3, atol=1e-3, rtol=1e-3), "3-step mismatch"

    # --- fused multi-step, fori_loop path (num_steps > 4) ---
    out8 = jax.block_until_ready(
        rk_integrate(x, W, b, dt=dt, method="rk4", num_steps=8))
    ref8 = _reference(x, W, b, dt=dt, method="rk4", num_steps=8,
                      matmul_dtype=jnp.bfloat16)
    assert jnp.allclose(out8, ref8, atol=2e-3, rtol=2e-3), "8-step mismatch"

    print("KERNEL_OK")
</pallas_src>

<mosaic_0001>
module attributes {stable_mosaic.version = 11 : i64} {
  func.func @_rk_kernel(%arg0: i32, %arg1: memref<128x128xf32, #tpu.memory_space<vmem>>, %arg2: memref<128x128xbf16, #tpu.memory_space<vmem>>, %arg3: memref<1x128xf32, #tpu.memory_space<vmem>>, %arg4: memref<128x128xf32, #tpu.memory_space<vmem>>) attributes {dimension_semantics = [#tpu.dimension_semantics<parallel>], iteration_bounds = array<i64: 2>, scalar_prefetch = 0 : i64, scratch_operands = 0 : i64, tpu.core_type = #tpu.core_type<tc>, window_params = [{transform_indices = @transform_0, window_bounds = array<i64: 128, 128>}, {pipeline_mode = #tpu.pipeline_mode<synchronous>, transform_indices = @transform_1, window_bounds = array<i64: 128, 128>}, {pipeline_mode = #tpu.pipeline_mode<synchronous>, transform_indices = @transform_2, window_bounds = array<i64: 1, 128>}, {transform_indices = @transform_3, window_bounds = array<i64: 128, 128>}]} {
    %c0 = arith.constant 0 : index
    %c0_0 = arith.constant 0 : index
    %0 = vector.load %arg2[%c0, %c0_0] : memref<128x128xbf16, #tpu.memory_space<vmem>>, vector<128x128xbf16>
    %c0_1 = arith.constant 0 : index
    %c0_2 = arith.constant 0 : index
    %1 = vector.load %arg3[%c0_1, %c0_2] : memref<1x128xf32, #tpu.memory_space<vmem>>, vector<1x128xf32>
    %2 = vector.shape_cast %1 : vector<1x128xf32> to vector<1x128xf32>
    %3 = vector.broadcast %2 : vector<1x128xf32> to vector<128x128xf32>
    %c0_3 = arith.constant 0 : index
    %c0_4 = arith.constant 0 : index
    %4 = vector.load %arg1[%c0_3, %c0_4] : memref<128x128xf32, #tpu.memory_space<vmem>>, vector<128x128xf32>
    %cst = arith.constant 0.000000e+00 : f32
    %5 = vector.broadcast %cst : f32 to vector<128x128xf32>
    %6 = arith.addf %4, %5 : vector<128x128xf32>
    %7 = arith.truncf %6 : vector<128x128xf32> to vector<128x128xbf16>
    %cst_5 = arith.constant dense<0.000000e+00> : vector<128x128xf32>
    %8 = tpu.matmul %7, %0, %cst_5 {dimension_numbers = #tpu.dot_dimension_numbers<[1], [0], [0], [1], [0, 0, 1, 1], [], []>} : vector<128x128xbf16>, vector<128x128xbf16>, vector<128x128xf32> -> vector<128x128xf32>
    %9 = arith.addf %8, %3 : vector<128x128xf32>
    %10 = math.tanh %9 : vector<128x128xf32>
    %cst_6 = arith.constant 0.00166666671 : f32
    %11 = vector.broadcast %cst_6 : f32 to vector<128x128xf32>
    %12 = arith.mulf %11, %10 : vector<128x128xf32>
    %13 = arith.addf %5, %12 : vector<128x128xf32>
    %14 = arith.addf %4, %13 : vector<128x128xf32>
    %15 = arith.truncf %14 : vector<128x128xf32> to vector<128x128xbf16>
    %cst_7 = arith.constant dense<0.000000e+00> : vector<128x128xf32>
    %16 = tpu.matmul %15, %0, %cst_7 {dimension_numbers = #tpu.dot_dimension_numbers<[1], [0], [0], [1], [0, 0, 1, 1], [], []>} : vector<128x128xbf16>, vector<128x128xbf16>, vector<128x128xf32> -> vector<128x128xf32>
    %17 = arith.addf %16, %3 : vector<128x128xf32>
    %18 = math.tanh %17 : vector<128x128xf32>
    %cst_8 = arith.constant 0.00333333341 : f32
    %19 = vector.broadcast %cst_8 : f32 to vector<128x128xf32>
    %20 = arith.mulf %19, %18 : vector<128x128xf32>
    %21 = arith.addf %13, %20 : vector<128x128xf32>
    %22 = arith.addf %4, %21 : vector<128x128xf32>
    %23 = arith.truncf %22 : vector<128x128xf32> to vector<128x128xbf16>
    %cst_9 = arith.constant dense<0.000000e+00> : vector<128x128xf32>
    %24 = tpu.matmul %23, %0, %cst_9 {dimension_numbers = #tpu.dot_dimension_numbers<[1], [0], [0], [1], [0, 0, 1, 1], [], []>} : vector<128x128xbf16>, vector<128x128xbf16>, vector<128x128xf32> -> vector<128x128xf32>
    %25 = arith.addf %24, %3 : vector<128x128xf32>
    %26 = math.tanh %25 : vector<128x128xf32>
    %cst_10 = arith.constant 0.00333333341 : f32
    %27 = vector.broadcast %cst_10 : f32 to vector<128x128xf32>
    %28 = arith.mulf %27, %26 : vector<128x128xf32>
    %29 = arith.addf %21, %28 : vector<128x128xf32>
    %30 = arith.addf %4, %29 : vector<128x128xf32>
    %31 = arith.truncf %30 : vector<128x128xf32> to vector<128x128xbf16>
    %cst_11 = arith.constant dense<0.000000e+00> : vector<128x128xf32>
    %32 = tpu.matmul %31, %0, %cst_11 {dimension_numbers = #tpu.dot_dimension_numbers<[1], [0], [0], [1], [0, 0, 1, 1], [], []>} : vector<128x128xbf16>, vector<128x128xbf16>, vector<128x128xf32> -> vector<128x128xf32>
    %33 = arith.addf %32, %3 : vector<128x128xf32>
    %34 = math.tanh %33 : vector<128x128xf32>
    %cst_12 = arith.constant 0.00166666671 : f32
    %35 = vector.broadcast %cst_12 : f32 to vector<128x128xf32>
    %36 = arith.mulf %35, %34 : vector<128x128xf32>
    %37 = arith.addf %29, %36 : vector<128x128xf32>
    %38 = arith.addf %4, %37 : vector<128x128xf32>
    %c0_13 = arith.constant 0 : index
    %c0_14 = arith.constant 0 : index
    %39 = vector.load %arg4[%c0_13, %c0_14] : memref<128x128xf32, #tpu.memory_space<vmem>>, vector<128x128xf32>
    tpu.vector_store %arg4[%c0_13, %c0_14], %38 {strides = array<i32>} : memref<128x128xf32, #tpu.memory_space<vmem>>, vector<128x128xf32>,
    return
  }
  func.func @transform_0(%arg0: i32) -> (i32, i32) {
    %c0_i32 = arith.constant 0 : i32
    %c0_i32_0 = arith.constant 0 : i32
    return %arg0, %c0_i32 : i32, i32
  }
  func.func @transform_1(%arg0: i32) -> (i32, i32) {
    %c0_i32 = arith.constant 0 : i32
    %c0_i32_0 = arith.constant 0 : i32
    %c0_i32_1 = arith.constant 0 : i32
    return %c0_i32, %c0_i32_0 : i32, i32
  }
  func.func @transform_2(%arg0: i32) -> (i32, i32) {
    %c0_i32 = arith.constant 0 : i32
    %c0_i32_0 = arith.constant 0 : i32
    %c0_i32_1 = arith.constant 0 : i32
    return %c0_i32, %c0_i32_0 : i32, i32
  }
  func.func @transform_3(%arg0: i32) -> (i32, i32) {
    %c0_i32 = arith.constant 0 : i32
    %c0_i32_0 = arith.constant 0 : i32
    return %arg0, %c0_i32 : i32, i32
  }
}

module attributes {stable_mosaic.version = 11 : i64} {
  func.func @_rk_kernel(%arg0: i32, %arg1: memref<128x128xf32, #tpu.memory_space<vmem>>, %arg2: memref<128x128xbf16, #tpu.memory_space<vmem>>, %arg3: memref<1x128xf32, #tpu.memory_space<vmem>>, %arg4: memref<128x128xf32, #tpu.memory_space<vmem>>) attributes {dimension_semantics = [#tpu.dimension_semantics<parallel>], iteration_bounds = array<i64: 2>, scalar_prefetch = 0 : i64, scratch_operands = 0 : i64, tpu.core_type = #tpu.core_type<tc>, window_params = [{transform_indices = @transform_0, window_bounds = array<i64: 128, 128>}, {pipeline_mode = #tpu.pipeline_mode<synchronous>, transform_indices = @transform_1, window_bounds = array<i64: 128, 128>}, {pipeline_mode = #tpu.pipeline_mode<synchronous>, transform_indices = @transform_2, window_bounds = array<i64: 1, 128>}, {transform_indices = @transform_3, window_bounds = array<i64: 128, 128>}]} {
    %c0 = arith.constant 0 : index
    %c0_0 = arith.constant 0 : index
    %0 = vector.load %arg2[%c0, %c0_0] : memref<128x128xbf16, #tpu.memory_space<vmem>>, vector<128x128xbf16>
    %c0_1 = arith.constant 0 : index
    %c0_2 = arith.constant 0 : index
    %1 = vector.load %arg3[%c0_1, %c0_2] : memref<1x128xf32, #tpu.memory_space<vmem>>, vector<1x128xf32>
    %2 = vector.shape_cast %1 : vector<1x128xf32> to vector<1x128xf32>
    %3 = vector.broadcast %2 : vector<1x128xf32> to vector<128x128xf32>
    %c0_3 = arith.constant 0 : index
    %c0_4 = arith.constant 0 : index
    %4 = vector.load %arg1[%c0_3, %c0_4] : memref<128x128xf32, #tpu.memory_space<vmem>>, vector<128x128xf32>
    %cst = arith.constant 0.000000e+00 : f32
    %5 = vector.broadcast %cst : f32 to vector<128x128xf32>
    %6 = arith.addf %4, %5 : vector<128x128xf32>
    %7 = arith.truncf %6 : vector<128x128xf32> to vector<128x128xbf16>
    %cst_5 = arith.constant dense<0.000000e+00> : vector<128x128xf32>
    %8 = tpu.matmul %7, %0, %cst_5 {dimension_numbers = #tpu.dot_dimension_numbers<[1], [0], [0], [1], [0, 0, 1, 1], [], []>} : vector<128x128xbf16>, vector<128x128xbf16>, vector<128x128xf32> -> vector<128x128xf32>
    %9 = arith.addf %8, %3 : vector<128x128xf32>
    %10 = math.tanh %9 : vector<128x128xf32>
    %cst_6 = arith.constant 0.00166666671 : f32
    %11 = vector.broadcast %cst_6 : f32 to vector<128x128xf32>
    %12 = arith.mulf %11, %10 : vector<128x128xf32>
    %13 = arith.addf %5, %12 : vector<128x128xf32>
    %14 = arith.addf %4, %13 : vector<128x128xf32>
    %15 = arith.truncf %14 : vector<128x128xf32> to vector<128x128xbf16>
    %cst_7 = arith.constant dense<0.000000e+00> : vector<128x128xf32>
    %16 = tpu.matmul %15, %0, %cst_7 {dimension_numbers = #tpu.dot_dimension_numbers<[1], [0], [0], [1], [0, 0, 1, 1], [], []>} : vector<128x128xbf16>, vector<128x128xbf16>, vector<128x128xf32> -> vector<128x128xf32>
    %17 = arith.addf %16, %3 : vector<128x128xf32>
    %18 = math.tanh %17 : vector<128x128xf32>
    %cst_8 = arith.constant 0.00333333341 : f32
    %19 = vector.broadcast %cst_8 : f32 to vector<128x128xf32>
    %20 = arith.mulf %19, %18 : vector<128x128xf32>
    %21 = arith.addf %13, %20 : vector<128x128xf32>
    %22 = arith.addf %4, %21 : vector<128x128xf32>
    %23 = arith.truncf %22 : vector<128x128xf32> to vector<128x128xbf16>
    %cst_9 = arith.constant dense<0.000000e+00> : vector<128x128xf32>
    %24 = tpu.matmul %23, %0, %cst_9 {dimension_numbers = #tpu.dot_dimension_numbers<[1], [0], [0], [1], [0, 0, 1, 1], [], []>} : vector<128x128xbf16>, vector<128x128xbf16>, vector<128x128xf32> -> vector<128x128xf32>
    %25 = arith.addf %24, %3 : vector<128x128xf32>
    %26 = math.tanh %25 : vector<128x128xf32>
    %cst_10 = arith.constant 0.00333333341 : f32
    %27 = vector.broadcast %cst_10 : f32 to vector<128x128xf32>
    %28 = arith.mulf %27, %26 : vector<128x128xf32>
    %29 = arith.addf %21, %28 : vector<128x128xf32>
    %30 = arith.addf %4, %29 : vector<128x128xf32>
    %31 = arith.truncf %30 : vector<128x128xf32> to vector<128x128xbf16>
    %cst_11 = arith.constant dense<0.000000e+00> : vector<128x128xf32>
    %32 = tpu.matmul %31, %0, %cst_11 {dimension_numbers = #tpu.dot_dimension_numbers<[1], [0], [0], [1], [0, 0, 1, 1], [], []>} : vector<128x128xbf16>, vector<128x128xbf16>, vector<128x128xf32> -> vector<128x128xf32>
    %33 = arith.addf %32, %3 : vector<128x128xf32>
    %34 = math.tanh %33 : vector<128x128xf32>
    %cst_12 = arith.constant 0.00166666671 : f32
    %35 = vector.broadcast %cst_12 : f32 to vector<128x128xf32>
    %36 = arith.mulf %35, %34 : vector<128x128xf32>
    %37 = arith.addf %29, %36 : vector<128x128xf32>
    %38 = arith.addf %4, %37 : vector<128x128xf32>
    %c0_13 = arith.constant 0 : index
    %c0_14 = arith.constant 0 : index
    %39 = vector.load %arg4[%c0_13, %c0_14] : memref<128x128xf32, #tpu.memory_space<vmem>>, vector<128x128xf32>
    tpu.vector_store %arg4[%c0_13, %c0_14], %38 {strides = array<i32>} : memref<128x128xf32, #tpu.memory_space<vmem>>, vector<128x128xf32>,
    return
  }
  func.func @transform_0(%arg0: i32) -> (i32, i32) {
    %c0_i32 = arith.constant 0 : i32
    %c0_i32_0 = arith.constant 0 : i32
    return %arg0, %c0_i32 : i32, i32
  }
  func.func @transform_1(%arg0: i32) -> (i32, i32) {
    %c0_i32 = arith.constant 0 : i32
    %c0_i32_0 = arith.constant 0 : i32
    %c0_i32_1 = arith.constant 0 : i32
    return %c0_i32, %c0_i32_0 : i32, i32
  }
  func.func @transform_2(%arg0: i32) -> (i32, i32) {
    %c0_i32 = arith.constant 0 : i32
    %c0_i32_0 = arith.constant 0 : i32
    %c0_i32_1 = arith.constant 0 : i32
    return %c0_i32, %c0_i32_0 : i32, i32
  }
  func.func @transform_3(%arg0: i32) -> (i32, i32) {
    %c0_i32 = arith.constant 0 : i32
    %c0_i32_0 = arith.constant 0 : i32
    return %arg0, %c0_i32 : i32, i32
  }
}

</mosaic_0001>

<bundles_post_ra>
// kernel: tpu_custom_call.1
= control target key start
LH: loop header
LB: loop body
LE: loop exit
PB: predicated region body
PF: predicated region fallthrough
CT: control target
= control target key end

     0   :  { %8 = vsyncpa [#allocation3], 0  ;;  %s2379_s0 = inlined_call_operand.hbm [shape: f32[256,128], index: 0, kind: input, shape index: {}]   ;;  %s2380_s1 = inlined_call_operand.hbm [shape: bf16[128,128], index: 1, kind: input, shape index: {}]   ;;  %s2381_s2 = inlined_call_operand.vmem [shape: f32[1,128], index: 2, kind: input, shape index: {}]   ;;  %s2382_s3 = inlined_call_operand.hbm [shape: f32[256,128], index: 3, kind: output, shape index: {}]  }
   0x1   :  { %10 = vsyncpa [#allocation3 + $0x1], 0 }
   0x2   :  { %11 = vsyncpa [#allocation6], 0 }
   0x3   :  { %12 = vsyncpa [#allocation4], 0 }
   0x4   :  { %14 = vsyncpa [#allocation4 + $0x1], 0  ;;  %s1684_s12 = smov 0   ;;  %s1686_s13 = smov 0  }
   0x5   :  { %s1688_s14 = smov 0   ;;  %s1690_s15 = smov 0  }
   0x6 LB: > { %s1705_s16 = sadd.s32 4294967295, %s1653_s15   ;;  %s1099_s17 = sadd.s32 4294967294, %s1653_s15   ;;  %s1653_s15 = sphi %s1690_s15, %s2402_s15   ;;  %s1649_s14 = sphi %s1688_s14, %s2401_s14   ;;  %s1645_s13 = sphi %s1686_s13, %s2400_s13   ;;  %s1641_s12 = sphi %s1684_s12, %s2399_s12  }
   0x7   : > { %p40_p0 = scmp.ne.s32.totalorder %s1645_s13, %s1641_s12  ;;  %p2383_p1 = scmp.eq.s32.totalorder %s1705_s16, 0 }
   0x8   : > { %p112_p3 = scmp.eq.s32.totalorder %s1099_s17, 1  ;;  %p1100_p5 = scmp.ge.s32.totalorder %s1653_s15, 1 }
   0x9   : > { %p1714_p4 = por %p2383_p1, %p40_p0  ;;  %p119_p7 = scmp.lt.s32.totalorder %s1653_s15, 3 }
   0xa   : > { %p1719_p6 = por %p112_p3, %p40_p0  ;;  %s1655_s21 = smov [#allocation5]  }
   0xb   : > { %s2386_s18 = scalar_select %p1714_p4, 1, 0 }
   0xc   : > { %s2387_s19 = scalar_select %p1719_p6, 1, 0 }
   0xd   : > { %p1724_p8 = pnand %p1100_p5, %p119_p7  ;;  %s131_s22 = sshll.u32 %s1655_s21, 4  ;;  %s1728_s22 = int_to_ptr.vmem [resolvable:$true] %s131_s22 }
   0xe   : > { %s1740_s24 = sadd.s32 1, %s1653_s15   ;;  %s27_s25 = sadd.s32 1, %s1649_s14 }
   0xf   : > { %s2388_s20 = scalar_select %p1724_p8, 1, 0 }
  0x10   : > { %p1326_p9 = pneg %p1724_p8  ;;  %s24_s26 = ssub.s32 %s1653_s15, %s1740_s24 }
  0x11   : > { %s1525_s29 = scalar_lea.hbm %s2380_s1, 1024 }
  0x12   : > { %p1735_p11 = pnand %p1326_p9, %p2383_p1  ;;  %p1526_p12 = scmp.ne.s32.totalorder %s2380_s1, %s1525_s29 }
  0x13   : > { %p1532_p5 = scmp.lt.u32.totalorder %s1525_s29, %s2380_s1 }
  0x14   : > { %p1527_p13 = pneg %p1735_p11 }
  0x16   : > { %p1528_p0 = pnand %p1527_p13, %p1526_p12 }
  0x18   : > { %p1529_p3 = pneg %p1528_p0 }
  0x1a   : > { %p1534_p7 = pnand %p1532_p5, %p1529_p3 }
  0x1c   : > { %1537 = shalt.err (!%p1534_p7)
}
  0x1d   : > { %s1538_s7 = scalar_lea.vmem %s1728_s22, 1024  ;;  %p1546_p2 = scmp.lt.s32.totalorder %s1728_s22, %s1728_s22 }
  0x1e   : > { %p1539_p9 = scmp.ne.s32.totalorder %s1728_s22, %s1538_s7  ;;  %p1547_p6 = scmp.lt.s32.totalorder %s1538_s7, %s1538_s7 }
  0x20   : > { %p1541_p10 = pnand %p1539_p9, %p1527_p13  ;;  %p1548_p4 = por %p1547_p6, %p1546_p2 }
  0x22   : > { %p1542_p1 = pneg %p1541_p10 }
  0x24   : > { %p1549_p8 = pnand %p1548_p4, %p1542_p1 }
  0x26   : > { %1552 = shalt.err (!%p1549_p8)
}
  0x27   : > { %s1656_s8 = smov 64   ;;  %s1657_s9 = smov 4  }
  0x28   : > { %1329 = dma.hbm_to_vmem [thread:$0]  (!%p1735_p11), %s2380_s1, 1024, %s1728_s22, [#allocation6], %s1656_s8, %s1656_s8, %s1657_s9  }
  0x29   : > { %p25_p2 = scmp.eq.s32.totalorder %s24_s26, 0  ;;  %p34_p1 = scmp.ne.s32.totalorder %s1649_s14, %s1645_s13 }
  0x2a   : > { %p35_p4 = scmp.eq.s32.totalorder %s1653_s15, 0  ;;  %p1339_p6 = scmp.lt.s32.totalorder %s1653_s15, 2 }
  0x2b   : > { %s1771_s17 = scalar_select %p25_p2, %s1649_s14, %s27_s25  }
  0x2c   : > { %p36_p8 = por %p35_p4, %p34_p1  ;;  %p2390_p10 = scmp.eq.s32.totalorder %s1705_s16, 1 }
  0x2d   : > { %s148_s27 = sand.u32 1, %s1649_s14   ;;  %s1124_s28 = sshll.u32 %s1653_s15, 11 }
  0x2e   : > { %p1775_p12 = por %p2390_p10, %p34_p1  ;;  %s1103_s29 = sshll.u32 %s148_s27, 7 }
  0x2f   : > { %s1784_s4 = scalar_lea.hbm %s2379_s0, %s1124_s28  ;;  %s152_s22 = scalar_lea.vmem [#allocation2], %s1103_s29 }
  0x30   : > { %s159_s25 = sshll.u32 %s152_s22, 4  ;;  %p1786_p11 = pnand %p1339_p6, %p36_p8  ;;  %s1790_s25 = int_to_ptr.vmem [resolvable:$true] %s159_s25 }
  0x31   : > { %s1792_s5 = scalar_lea.sflag [#allocation3], %s148_s27  ;;  %s1553_s6 = scalar_lea.hbm %s1784_s4, 2048 }
  0x32   : > { %p1554_p13 = scmp.ne.s32.totalorder %s1784_s4, %s1553_s6  ;;  %p1555_p0 = pneg %p1786_p11 }
  0x33   : > { %s1558_s9 = scalar_lea.hbm %s2379_s0, 4096  ;;  %p1559_p7 = scmp.lt.u32.totalorder %s1784_s4, %s2379_s0 }
  0x34   : > { %p1556_p3 = pnand %p1555_p0, %p1554_p13  ;;  %p1560_p9 = scmp.lt.u32.totalorder %s1558_s9, %s1553_s6 }
  0x35   : > { %p1562_p1 = scmp.lt.u32.totalorder %s1553_s6, %s1784_s4 }
  0x36   : > { %p1557_p5 = pneg %p1556_p3  ;;  %p1561_p2 = por %p1560_p9, %p1559_p7 }
  0x38   : > { %p1563_p4 = por %p1562_p1, %p1561_p2 }
  0x3a   : > { %p1564_p6 = pnand %p1563_p4, %p1557_p5 }
  0x3c   : > { %1567 = shalt.err (!%p1564_p6)
}
  0x3d   : > { %s1568_s27 = scalar_lea.vmem %s1790_s25, 2048  ;;  %s1658_s28 = smov [#allocation2]  }
  0x3e   : > { %p1569_p8 = scmp.ne.s32.totalorder %s1790_s25, %s1568_s27  ;;  %s1573_s29 = sshll.u32 %s1658_s28, 4  ;;  %s1574_s29 = int_to_ptr.vmem [resolvable:$false] %s1573_s29 }
  0x3f   : > { %s1575_s23 = scalar_lea.vmem %s1574_s29, 4096  ;;  %p1576_p3 = scmp.lt.s32.totalorder %s1790_s25, %s1574_s29 }
  0x40   : > { %p1571_p10 = pnand %p1569_p8, %p1555_p0  ;;  %p1577_p7 = scmp.lt.s32.totalorder %s1575_s23, %s1568_s27 }
  0x42   : > { %p1572_p13 = pneg %p1571_p10  ;;  %p1578_p9 = por %p1577_p7, %p1576_p3 }
  0x44   : > { %p1579_p2 = pnand %p1578_p9, %p1572_p13 }
  0x46   : > { %1582 = shalt.err (!%p1579_p2)
}
  0x47   : > { %s1659_s30 = smov 128   ;;  %s1660_s22 = smov 8  }
  0x48   : > { %1333 = dma.hbm_to_vmem [thread:$0]  (!%p1786_p11), %s1784_s4, 2048, %s1790_s25, %s1792_s5, %s1659_s30, %s1659_s30, %s1660_s22  }
  0x49   : > { %p2393_p0 = scmp.ne.s32.totalorder %s2388_s20, 0 }
  0x4a   : > { %s1823_s6 = sand.u32 (!%p2393_p0), 1, %s1645_s13   ;;  %p2394_p5 = scmp.ne.s32.totalorder (!%p2393_p0), %s2386_s18, 0 }
  0x4b   : > { %171 = sbr.rel (%p2393_p0) target bundleno = 1101 (0x44d), region = 32  ;;  %s1107_s7 = sshll.u32 (!%p2393_p0), %s1823_s6, 7 }
  0x4c   : > { %s174_s8 = scalar_lea.sflag (!%p2393_p0), [#allocation3], %s1823_s6  ;;  %s1829_s9 = scalar_lea.vmem (!%p2393_p0), [#allocation2], %s1107_s7 }
  0x52   : > { %1628 = dma.done.wait (%p2394_p5), %s174_s8, 2048  }
  0x53   : > { %1630 = vsyncadd (%p2394_p5), %s174_s8, 4294965248  ;;  %p2395_p11 = scmp.eq.s32.totalorder %s1705_s16, 0 }
  0x55   : > { %1632 = dma.done.wait (%p2395_p11), [#allocation6], 1024   ;;  %p2396_p1 = pmov %p2395_p11 }
  0x56   : > { %v1839_v0 = vld [vmem:[#allocation5] sm:$0xff]   ;;  %v1841_v1 = vld [vmem:[#allocation5 + $0x8] sm:$0xff]   ;;  %v1848_v2 = vld [vmem:[#allocation5 + $0x10] sm:$0xff]   ;;  %s2279_s4 = scalar_lea.vmem [#allocation7], %s1107_s7  ;;  %s1125_s25 = sshll.u32 %s1705_s16, 11 }
  0x57   : > { %1634 = vsyncadd (%p2396_p1), [#allocation6], 4294966272  ;;  %1190 = vmatprep.subr.bf16.mxu0 %v1839_v0  ;;  %1222 = vmatprep.subr.bf16.mxu1 %v1839_v0  ;;  %v1854_v3 = vld [vmem:[#allocation5 + $0x18] sm:$0xff]   ;;  %v1857_v4 = vld [vmem:[%s1829_s9] sm:$0xff]  ;;  %s1016_s26 = sshll.u32 %s2279_s4, 4  ;;  %s2329_s16 = scalar_lea.hbm %s2382_s3, %s1125_s25  ;;  %s2331_s26 = int_to_ptr.vmem [resolvable:$true] %s1016_s26 }
  0x58   : > { %1191 = vmatpush3.bf16.msra.mxu0 %v1839_v0  ;;  %1223 = vmatpush3.bf16.msra.mxu1 %v1839_v0  ;;  %v1860_v5 = vld [vmem:[%s1829_s9 + $0x8] sm:$0xff]  ;;  %v1867_v7 = vld [vmem:[#allocation5 + $0x20] sm:$0xff]   ;;  %v1879_v9 = vld [vmem:[#allocation5 + $0x30] sm:$0xff]   ;;  %s1003_s11 = scalar_lea.sflag [#allocation4], %s1823_s6  ;;  %s1583_s27 = scalar_lea.vmem %s2331_s26, 2048 }
  0x59   : > { %1192 = vmatprep.subr.bf16.mxu0 %v1841_v1  ;;  %1224 = vmatprep.subr.bf16.mxu1 %v1841_v1  ;;  %v262_v6 = vpack.c.bf16 %v1860_v5, %v1857_v4  ;;  %v1873_v8 = vld [vmem:[#allocation5 + $0x28] sm:$0xff]   ;;  %v1885_v10 = vld [vmem:[#allocation5 + $0x38] sm:$0xff]   ;;  %v1891_v11 = vld [vmem:[%s1829_s9 + $0x10] sm:$0xff]  ;;  %p1584_p4 = scmp.ne.s32.totalorder %s2331_s26, %s1583_s27  ;;  %s1661_s28 = smov [#allocation7]  }
  0x5a   : > { %v1894_v12 = vld [vmem:[%s1829_s9 + $0x18] sm:$0xff]  ;;  %v1898_v13 = vld [vmem:[%s1829_s9 + $0x20] sm:$0xff]  ;;  %v1901_v14 = vld [vmem:[%s1829_s9 + $0x28] sm:$0xff]  ;;  %s1587_s29 = sshll.u32 %s1661_s28, 4  ;;  %s1588_s29 = int_to_ptr.vmem [resolvable:$false] %s1587_s29 }
  0x5b   : > { %1206 = vmatprep.mubr.bf16.mxu0 %v262_v6  ;;  %v263_v15 = vpack.c.bf16 %v1894_v12, %v1891_v11  ;;  %v264_v16 = vpack.c.bf16 %v1901_v14, %v1898_v13  ;;  %v1914_v17 = vld [vmem:[%s1829_s9 + $0x30] sm:$0xff]  ;;  %v1917_v18 = vld [vmem:[%s1829_s9 + $0x38] sm:$0xff]  ;;  %v1921_v19 = vld [vmem:[%s1829_s9 + $0x40] sm:$0xff]  ;;  %p1585_p6 = pnand %p1584_p4, %p1775_p12  ;;  %s1589_s23 = scalar_lea.vmem %s1588_s29, 4096 }
  0x5c   : > { %1193 = vmatpush3.bf16.msra.mxu0 %v1841_v1  ;;  %1225 = vmatpush3.bf16.msra.mxu1 %v1841_v1  ;;  %v1924_v20 = vld [vmem:[%s1829_s9 + $0x48] sm:$0xff]  ;;  %v265_v21 = vpack.c.bf16 %v1917_v18, %v1914_v17  ;;  %v1934_v23 = vld [vmem:[%s1829_s9 + $0x50] sm:$0xff]  ;;  %v1937_v24 = vld [vmem:[%s1829_s9 + $0x58] sm:$0xff]  ;;  %p1590_p10 = scmp.lt.s32.totalorder %s2331_s26, %s1588_s29  ;;  %p1591_p13 = scmp.lt.s32.totalorder %s1589_s23, %s1583_s27 }
  0x5d   : > { %1194 = vmatprep.subr.bf16.mxu0 %v1848_v2  ;;  %1226 = vmatprep.subr.bf16.mxu1 %v1848_v2  ;;  %v266_v22 = vpack.c.bf16 %v1924_v20, %v1921_v19  ;;  %v1941_v25 = vld [vmem:[%s1829_s9 + $0x60] sm:$0xff]  ;;  %v1944_v26 = vld [vmem:[%s1829_s9 + $0x68] sm:$0xff]  ;;  %v267_v27 = vpack.c.bf16 %v1937_v24, %v1934_v23  ;;  %v1954_v29 = vld [vmem:[%s1829_s9 + $0x70] sm:$0xff]  ;;  %p1586_p8 = pneg %p1585_p6 }
  0x5e   : > { %v268_v28 = vpack.c.bf16 %v1944_v26, %v1941_v25  ;;  %v1957_v30 = vld [vmem:[%s1829_s9 + $0x78] sm:$0xff]  ;;  %v1971_v32 = vld [vmem:[%s2381_s2] ss:$0 sm:$0xff]  ;;  %p1592_p3 = por %p1591_p13, %p1590_p10 }
  0x5f   : > { %v269_v31 = vpack.c.bf16 %v1957_v30, %v1954_v29 }
  0x60   : > { %1195 = vmatpush3.bf16.msra.mxu0 %v1848_v2  ;;  %1227 = vmatpush3.bf16.msra.mxu1 %v1848_v2  ;;  %p1593_p7 = pnand %p1592_p3, %p1586_p8 }
  0x61   : > { %1196 = vmatprep.subr.bf16.mxu0 %v1854_v3  ;;  %1228 = vmatprep.subr.bf16.mxu1 %v1854_v3 }
  0x64   : > { %1197 = vmatpush3.bf16.msra.mxu0 %v1854_v3  ;;  %1229 = vmatpush3.bf16.msra.mxu1 %v1854_v3 }
  0x65   : > { %1198 = vmatprep.subr.bf16.mxu0 %v1867_v7  ;;  %1230 = vmatprep.subr.bf16.mxu1 %v1867_v7 }
  0x68   : > { %1199 = vmatpush3.bf16.msra.mxu0 %v1867_v7  ;;  %1231 = vmatpush3.bf16.msra.mxu1 %v1867_v7 }
  0x69   : > { %1200 = vmatprep.subr.bf16.mxu0 %v1873_v8  ;;  %1232 = vmatprep.subr.bf16.mxu1 %v1873_v8 }
  0x6c   : > { %1201 = vmatpush3.bf16.msra.mxu0 %v1873_v8  ;;  %1233 = vmatpush3.bf16.msra.mxu1 %v1873_v8 }
  0x6d   : > { %1202 = vmatprep.subr.bf16.mxu0 %v1879_v9  ;;  %1234 = vmatprep.subr.bf16.mxu1 %v1879_v9 }
  0x70   : > { %1203 = vmatpush3.bf16.msra.mxu0 %v1879_v9  ;;  %1235 = vmatpush3.bf16.msra.mxu1 %v1879_v9 }
  0x71   : > { %1204 = vmatprep.subr.bf16.mxu0 %v1885_v10  ;;  %1236 = vmatprep.subr.bf16.mxu1 %v1885_v10 }
  0x74   : > { %1205 = vmatpush3.bf16.msra.mxu0 %v1885_v10  ;;  %1237 = vmatpush3.bf16.msra.mxu1 %v1885_v10 }
  0x75   : > { %1254 = vmatprep.subr.bf16.mxu0 %v1839_v0  ;;  %1286 = vmatprep.subr.bf16.mxu1 %v1839_v0 }
  0x77   : > { %1207 = vmatmul.mubr.bf16.vlgmr.msra.gmra.mrb[0].mxu0 %v263_v15 }
  0x78   : > { %1210 = vmatprep.mubr.bf16.mxu0 %v264_v16  ;;  %1255 = vmatpush3.bf16.msra.mxu0 %v1839_v0 }
  0x79   : > { %1256 = vmatprep.subr.bf16.mxu0 %v1841_v1 }
  0x7c   : > { %1257 = vmatpush3.bf16.msra.mxu0 %v1841_v1 }
  0x7d   : > { %1258 = vmatprep.subr.bf16.mxu0 %v1848_v2 }
  0x7f   : > { %1211 = vmatmul.mubr.bf16.gmra.mrb[4].mxu0 %v265_v21 }
  0x80   : > { %1214 = vmatprep.mubr.bf16.mxu0 %v266_v22  ;;  %1259 = vmatpush3.bf16.msra.mxu0 %v1848_v2 }
  0x81   : > { %1260 = vmatprep.subr.bf16.mxu0 %v1854_v3 }
  0x84   : > { %1261 = vmatpush3.bf16.msra.mxu0 %v1854_v3 }
  0x85   : > { %1262 = vmatprep.subr.bf16.mxu0 %v1867_v7 }
  0x87   : > { %1215 = vmatmul.mubr.bf16.gmra.mrb[8].mxu0 %v267_v27 }
  0x88   : > { %1218 = vmatprep.mubr.bf16.mxu0 %v268_v28  ;;  %1263 = vmatpush3.bf16.msra.mxu0 %v1867_v7 }
  0x89   : > { %1264 = vmatprep.subr.bf16.mxu0 %v1873_v8 }
  0x8c   : > { %1265 = vmatpush3.bf16.msra.mxu0 %v1873_v8 }
  0x8d   : > { %1266 = vmatprep.subr.bf16.mxu0 %v1879_v9 }
  0x8f   : > { %1219 = vmatmul.mubr.bf16.gmra.mrb[12].mxu0 %v269_v31 }
  0x90   : > { %1267 = vmatpush3.bf16.msra.mxu0 %v1879_v9 }
  0x91   : > { %1268 = vmatprep.subr.bf16.mxu0 %v1885_v10 }
  0x94   : > { %1269 = vmatpush3.bf16.msra.mxu0 %v1885_v10 }
 0x14a   : > { %v1208_v33 = vpop.f32.mrb[0].mxu0 }
 0x14b   : > { %v361_v34 = vadd.f32 %v1208_v33, %v1971_v32  ;;  %v352_v35 = vpop.f32.mrb[1].mxu0 }
 0x14c   : > { %v353_v36 = vadd.f32 %v1971_v32, %v352_v35  ;;  %v1209_v37 = vpop.f32.mrb[2].mxu0 }
 0x14d   : > { %1389 = vtanh.f32 %v361_v34  ;;  %v364_v38 = vadd.f32 %v1209_v37, %v1971_v32  ;;  %v355_v39 = vpop.f32.mrb[3].mxu0 }
 0x14e   : > { %1391 = vtanh.f32 %v353_v36  ;;  %v356_v40 = vadd.f32 %v1971_v32, %v355_v39 }
 0x14f   : > { %1393 = vtanh.f32 %v364_v38 }
 0x150   : > { %1395 = vtanh.f32 %v356_v40 }
 0x152   : > { %v1212_v41 = vpop.f32.mrb[4].mxu0 }
 0x153   : > { %v377_v42 = vadd.f32 %v1212_v41, %v1971_v32  ;;  %v368_v43 = vpop.f32.mrb[5].mxu0 }
 0x154   : > { %v369_v44 = vadd.f32 %v1971_v32, %v368_v43  ;;  %v1213_v45 = vpop.f32.mrb[6].mxu0 }
 0x155   : > { %1397 = vtanh.f32 %v377_v42  ;;  %v380_v46 = vadd.f32 %v1213_v45, %v1971_v32  ;;  %v371_v47 = vpop.f32.mrb[7].mxu0 }
 0x156   : > { %1399 = vtanh.f32 %v369_v44  ;;  %v372_v48 = vadd.f32 %v1971_v32, %v371_v47 }
 0x157   : > { %v1390_v49 = vpop.eup %1389  ;;  %1401 = vtanh.f32 %v380_v46 }
 0x158   : > { %v1392_v50 = vpop.eup %1391  ;;  %1403 = vtanh.f32 %v372_v48  ;;  %v1983_v54 = vmul.f32 0.0016666667, %v1390_v49 }
 0x159   : > { %v1394_v51 = vpop.eup %1393  ;;  %v1981_v52 = vmul.f32 0.0016666667, %v1392_v50 }
 0x15a   : > { %v1396_v53 = vpop.eup %1395  ;;  %v1985_v55 = vmul.f32 0.0016666667, %v1394_v51  ;;  %v1216_v56 = vpop.f32.mrb[8].mxu0  ;;  %v465_v21 = vadd.f32 %v1983_v54, %v1891_v11 }
 0x15b   : > { %v1987_v57 = vmul.f32 0.0016666667, %v1396_v53  ;;  %v393_v58 = vadd.f32 %v1216_v56, %v1971_v32  ;;  %v384_v59 = vpop.f32.mrb[9].mxu0  ;;  %v463_v15 = vadd.f32 %v1981_v52, %v1857_v4 }
 0x15c   : > { %v466_v60 = vadd.f32 %v1985_v55, %v1894_v12  ;;  %v385_v61 = vadd.f32 %v1971_v32, %v384_v59  ;;  %v1217_v62 = vpop.f32.mrb[10].mxu0 }
 0x15d   : > { %1405 = vtanh.f32 %v393_v58  ;;  %v396_v63 = vadd.f32 %v1217_v62, %v1971_v32  ;;  %v387_v6 = vpop.f32.mrb[11].mxu0  ;;  %v464_v16 = vadd.f32 %v1987_v57, %v1860_v5 }
 0x15e   : > { %1407 = vtanh.f32 %v385_v61  ;;  %v388_v22 = vadd.f32 %v1971_v32, %v387_v6  ;;  %v480_v33 = vpack.c.bf16 %v466_v60, %v465_v21 }
 0x15f   : > { %v1398_v27 = vpop.eup %1397  ;;  %1409 = vtanh.f32 %v396_v63  ;;  %v479_v28 = vpack.c.bf16 %v464_v16, %v463_v15 }
 0x160   : > { %v1400_v31 = vpop.eup %1399  ;;  %1411 = vtanh.f32 %v388_v22  ;;  %v2003_v37 = vmul.f32 0.0016666667, %v1398_v27 }
 0x161   : > { %v1402_v34 = vpop.eup %1401  ;;  %v2001_v35 = vmul.f32 0.0016666667, %v1400_v31  ;;  %1238 = vmatprep.mubr.bf16.mxu1 %v479_v28 }
 0x162   : > { %v1404_v36 = vpop.eup %1403  ;;  %v2005_v38 = vmul.f32 0.0016666667, %v1402_v34  ;;  %v1220_v39 = vpop.f32.mrb[12].mxu0  ;;  %1239 = vmatmul.mubr.bf16.vlgmr.msra.gmra.mrb[0].mxu1 %v480_v33 }
 0x163   : > { %v2007_v40 = vmul.f32 0.0016666667, %v1404_v36  ;;  %v409_v41 = vadd.f32 %v1220_v39, %v1971_v32  ;;  %v400_v42 = vpop.f32.mrb[13].mxu0  ;;  %1287 = vmatpush3.bf16.msra.mxu1 %v1839_v0  ;;  %v467_v46 = vadd.f32 %v2001_v35, %v1898_v13  ;;  %v469_v0 = vadd.f32 %v2003_v37, %v1914_v17 }
 0x164   : > { %v470_v43 = vadd.f32 %v2005_v38, %v1917_v18  ;;  %v401_v44 = vadd.f32 %v1971_v32, %v400_v42  ;;  %v1221_v45 = vpop.f32.mrb[14].mxu0  ;;  %1288 = vmatprep.subr.bf16.mxu1 %v1841_v1 }
 0x165   : > { %v468_v47 = vadd.f32 %v2007_v40, %v1901_v14  ;;  %1413 = vtanh.f32 %v409_v41  ;;  %v412_v48 = vadd.f32 %v1221_v45, %v1971_v32  ;;  %v403_v49 = vpop.f32.mrb[15].mxu0 }
 0x166   : > { %1415 = vtanh.f32 %v401_v44  ;;  %v404_v50 = vadd.f32 %v1971_v32, %v403_v49  ;;  %v482_v58 = vpack.c.bf16 %v470_v43, %v469_v0 }
 0x167   : > { %v1406_v51 = vpop.eup %1405  ;;  %1417 = vtanh.f32 %v412_v48  ;;  %v481_v53 = vpack.c.bf16 %v468_v47, %v467_v46  ;;  %1289 = vmatpush3.bf16.msra.mxu1 %v1841_v1 }
 0x168   : > { %v1408_v56 = vpop.eup %1407  ;;  %1419 = vtanh.f32 %v404_v50  ;;  %1290 = vmatprep.subr.bf16.mxu1 %v1848_v2  ;;  %v2027_v62 = vmul.f32 0.0016666667, %v1406_v51 }
 0x169   : > { %v1410_v59 = vpop.eup %1409  ;;  %v2025_v60 = vmul.f32 0.0016666667, %v1408_v56  ;;  %1242 = vmatprep.mubr.bf16.mxu1 %v481_v53 }
 0x16a   : > { %v1412_v61 = vpop.eup %1411  ;;  %v2029_v63 = vmul.f32 0.0016666667, %v1410_v59  ;;  %1243 = vmatmul.mubr.bf16.gmra.mrb[4].mxu1 %v482_v58  ;;  %v473_v21 = vadd.f32 %v2027_v62, %v1934_v23 }
 0x16b   : > { %v2031_v6 = vmul.f32 0.0016666667, %v1412_v61  ;;  %1291 = vmatpush3.bf16.msra.mxu1 %v1848_v2  ;;  %v471_v15 = vadd.f32 %v2025_v60, %v1921_v19 }
 0x16c   : > { %v474_v1 = vadd.f32 %v2029_v63, %v1937_v24  ;;  %1292 = vmatprep.subr.bf16.mxu1 %v1854_v3 }
 0x16d   : > { %v472_v16 = vadd.f32 %v2031_v6, %v1924_v20 }
 0x16e   : > { %v484_v2 = vpack.c.bf16 %v474_v1, %v473_v21 }
 0x16f   : > { %v1414_v22 = vpop.eup %1413  ;;  %v483_v27 = vpack.c.bf16 %v472_v16, %v471_v15  ;;  %1293 = vmatpush3.bf16.msra.mxu1 %v1854_v3 }
 0x170   : > { %v1416_v28 = vpop.eup %1415  ;;  %1294 = vmatprep.subr.bf16.mxu1 %v1867_v7  ;;  %v2047_v36 = vmul.f32 0.0016666667, %v1414_v22 }
 0x171   : > { %v1418_v31 = vpop.eup %1417  ;;  %v2045_v33 = vmul.f32 0.0016666667, %v1416_v28  ;;  %1246 = vmatprep.mubr.bf16.mxu1 %v483_v27 }
 0x172   : > { %v1420_v34 = vpop.eup %1419  ;;  %v2049_v39 = vmul.f32 0.0016666667, %v1418_v31  ;;  %1247 = vmatmul.mubr.bf16.gmra.mrb[8].mxu1 %v484_v2  ;;  %v477_v44 = vadd.f32 %v2047_v36, %v1954_v29 }
 0x173   : > { %v2051_v41 = vmul.f32 0.0016666667, %v1420_v34  ;;  %1295 = vmatpush3.bf16.msra.mxu1 %v1867_v7  ;;  %v475_v42 = vadd.f32 %v2045_v33, %v1941_v25 }
 0x174   : > { %v478_v3 = vadd.f32 %v2049_v39, %v1957_v30  ;;  %1296 = vmatprep.subr.bf16.mxu1 %v1873_v8 }
 0x175   : > { %v476_v43 = vadd.f32 %v2051_v41, %v1944_v26 }
 0x176   : > { %v486_v46 = vpack.c.bf16 %v478_v3, %v477_v44 }
 0x177   : > { %v485_v45 = vpack.c.bf16 %v476_v43, %v475_v42  ;;  %1297 = vmatpush3.bf16.msra.mxu1 %v1873_v8 }
 0x178   : > { %1298 = vmatprep.subr.bf16.mxu1 %v1879_v9 }
 0x179   : > { %1250 = vmatprep.mubr.bf16.mxu1 %v485_v45 }
 0x17a   : > { %1251 = vmatmul.mubr.bf16.gmra.mrb[12].mxu1 %v486_v46 }
 0x17b   : > { %1299 = vmatpush3.bf16.msra.mxu1 %v1879_v9 }
 0x17c   : > { %1300 = vmatprep.subr.bf16.mxu1 %v1885_v10 }
 0x17f   : > { %1301 = vmatpush3.bf16.msra.mxu1 %v1885_v10 }
 0x235   : > { %v1240_v7 = vpop.f32.mrb[0].mxu1 }
 0x236   : > { %v530_v47 = vadd.f32 %v1240_v7, %v1971_v32  ;;  %v521_v48 = vpop.f32.mrb[1].mxu1 }
 0x237   : > { %v522_v49 = vadd.f32 %v1971_v32, %v521_v48  ;;  %v1241_v0 = vpop.f32.mrb[2].mxu1 }
 0x238   : > { %1421 = vtanh.f32 %v530_v47  ;;  %v533_v8 = vadd.f32 %v1241_v0, %v1971_v32  ;;  %v524_v50 = vpop.f32.mrb[3].mxu1 }
 0x239   : > { %1423 = vtanh.f32 %v522_v49  ;;  %v525_v51 = vadd.f32 %v1971_v32, %v524_v50 }
 0x23a   : > { %1425 = vtanh.f32 %v533_v8 }
 0x23b   : > { %1427 = vtanh.f32 %v525_v51 }
 0x23d   : > { %v1244_v9 = vpop.f32.mrb[4].mxu1 }
 0x23e   : > { %v546_v53 = vadd.f32 %v1244_v9, %v1971_v32  ;;  %v537_v10 = vpop.f32.mrb[5].mxu1 }
 0x23f   : > { %v538_v56 = vadd.f32 %v1971_v32, %v537_v10  ;;  %v1245_v58 = vpop.f32.mrb[6].mxu1 }
 0x240   : > { %1429 = vtanh.f32 %v546_v53  ;;  %v549_v59 = vadd.f32 %v1245_v58, %v1971_v32  ;;  %v540_v61 = vpop.f32.mrb[7].mxu1 }
 0x241   : > { %1431 = vtanh.f32 %v538_v56  ;;  %v541_v1 = vadd.f32 %v1971_v32, %v540_v61 }
 0x242   : > { %v1422_v15 = vpop.eup %1421  ;;  %1433 = vtanh.f32 %v549_v59 }
 0x243   : > { %v1424_v16 = vpop.eup %1423  ;;  %v602_v21 = vmul.f32 0.0033333334, %v1422_v15  ;;  %1435 = vtanh.f32 %v541_v1 }
 0x244   : > { %v1426_v22 = vpop.eup %1425  ;;  %v600_v27 = vmul.f32 0.0033333334, %v1424_v16 }
 0x245   : > { %v1428_v28 = vpop.eup %1427  ;;  %v603_v2 = vmul.f32 0.0033333334, %v1426_v22  ;;  %v1248_v31 = vpop.f32.mrb[8].mxu1  ;;  %v2081_v44 = vadd.f32 %v602_v21, %v1983_v54 }
 0x246   : > { %v2077_v34 = vadd.f32 %v600_v27, %v1981_v52  ;;  %v601_v3 = vmul.f32 0.0033333334, %v1428_v28  ;;  %v562_v42 = vadd.f32 %v1248_v31, %v1971_v32  ;;  %v553_v43 = vpop.f32.mrb[9].mxu1 }
 0x247   : > { %v2084_v45 = vadd.f32 %v603_v2, %v1985_v55  ;;  %v554_v46 = vadd.f32 %v1971_v32, %v553_v43  ;;  %v1249_v7 = vpop.f32.mrb[10].mxu1  ;;  %v634_v50 = vadd.f32 %v2081_v44, %v1891_v11 }
 0x248   : > { %v2088_v47 = vadd.f32 %v601_v3, %v1987_v57  ;;  %1437 = vtanh.f32 %v562_v42  ;;  %v565_v52 = vadd.f32 %v1249_v7, %v1971_v32  ;;  %v556_v48 = vpop.f32.mrb[11].mxu1  ;;  %v632_v55 = vadd.f32 %v2077_v34, %v1857_v4 }
 0x249   : > { %v635_v49 = vadd.f32 %v2084_v45, %v1894_v12  ;;  %1439 = vtanh.f32 %v554_v46  ;;  %v557_v54 = vadd.f32 %v1971_v32, %v556_v48 }
 0x24a   : > { %v1430_v0 = vpop.eup %1429  ;;  %1441 = vtanh.f32 %v565_v52  ;;  %v633_v8 = vadd.f32 %v2088_v47, %v1860_v5 }
 0x24b   : > { %v1432_v57 = vpop.eup %1431  ;;  %v606_v51 = vmul.f32 0.0033333334, %v1430_v0  ;;  %1443 = vtanh.f32 %v557_v54  ;;  %v649_v58 = vpack.c.bf16 %v635_v49, %v634_v50 }
 0x24c   : > { %v1434_v9 = vpop.eup %1433  ;;  %v604_v53 = vmul.f32 0.0033333334, %v1432_v57  ;;  %v648_v10 = vpack.c.bf16 %v633_v8, %v632_v55 }
 0x24d   : > { %v1436_v56 = vpop.eup %1435  ;;  %v607_v59 = vmul.f32 0.0033333334, %v1434_v9  ;;  %v1252_v61 = vpop.f32.mrb[12].mxu1  ;;  %v2105_v22 = vadd.f32 %v606_v51, %v2003_v37 }
 0x24e   : > { %v2101_v1 = vadd.f32 %v604_v53, %v2001_v35  ;;  %v605_v15 = vmul.f32 0.0033333334, %v1436_v56  ;;  %v578_v16 = vadd.f32 %v1252_v61, %v1971_v32  ;;  %v569_v21 = vpop.f32.mrb[13].mxu1  ;;  %1270 = vmatprep.mubr.bf16.mxu0 %v648_v10 }
 0x24f   : > { %v2108_v27 = vadd.f32 %v607_v59, %v2005_v38  ;;  %v570_v28 = vadd.f32 %v1971_v32, %v569_v21  ;;  %v1253_v2 = vpop.f32.mrb[14].mxu1  ;;  %1271 = vmatmul.mubr.bf16.vlgmr.msra.gmra.mrb[16].mxu0 %v649_v58  ;;  %v638_v52 = vadd.f32 %v2105_v22, %v1914_v17 }
 0x250   : > { %v2112_v31 = vadd.f32 %v605_v15, %v2007_v40  ;;  %1445 = vtanh.f32 %v578_v16  ;;  %v581_v35 = vadd.f32 %v1253_v2, %v1971_v32  ;;  %v572_v3 = vpop.f32.mrb[15].mxu1  ;;  %v636_v38 = vadd.f32 %v2101_v1, %v1898_v13 }
 0x251   : > { %1447 = vtanh.f32 %v570_v28  ;;  %v573_v42 = vadd.f32 %v1971_v32, %v572_v3  ;;  %v639_v37 = vadd.f32 %v2108_v27, %v1917_v18 }
 0x252   : > { %v1438_v43 = vpop.eup %1437  ;;  %1449 = vtanh.f32 %v581_v35  ;;  %v637_v46 = vadd.f32 %v2112_v31, %v1901_v14 }
 0x253   : > { %v1440_v40 = vpop.eup %1439  ;;  %v610_v7 = vmul.f32 0.0033333334, %v1438_v43  ;;  %1451 = vtanh.f32 %v573_v42  ;;  %v651_v8 = vpack.c.bf16 %v639_v37, %v638_v52 }
 0x254   : > { %v1442_v48 = vpop.eup %1441  ;;  %v608_v49 = vmul.f32 0.0033333334, %v1440_v40  ;;  %v650_v54 = vpack.c.bf16 %v637_v46, %v636_v38 }
 0x255   : > { %v1444_v0 = vpop.eup %1443  ;;  %v611_v55 = vmul.f32 0.0033333334, %v1442_v48  ;;  %v2128_v51 = vadd.f32 %v610_v7, %v2027_v62 }
 0x256   : > { %v2125_v57 = vadd.f32 %v608_v49, %v2025_v60  ;;  %v609_v50 = vmul.f32 0.0033333334, %v1444_v0  ;;  %1274 = vmatprep.mubr.bf16.mxu0 %v650_v54 }
 0x257   : > { %v2131_v9 = vadd.f32 %v611_v55, %v2029_v63  ;;  %1275 = vmatmul.mubr.bf16.gmra.mrb[20].mxu0 %v651_v8  ;;  %v642_v63 = vadd.f32 %v2128_v51, %v1934_v23 }
 0x258   : > { %v2134_v53 = vadd.f32 %v609_v50, %v2031_v6  ;;  %v640_v60 = vadd.f32 %v2125_v57, %v1921_v19 }
 0x259   : > { %v643_v10 = vadd.f32 %v2131_v9, %v1937_v24 }
 0x25a   : > { %v1446_v56 = vpop.eup %1445  ;;  %v641_v58 = vadd.f32 %v2134_v53, %v1924_v20 }
 0x25b   : > { %v1448_v59 = vpop.eup %1447  ;;  %v614_v62 = vmul.f32 0.0033333334, %v1446_v56  ;;  %v653_v28 = vpack.c.bf16 %v643_v10, %v642_v63 }
 0x25c   : > { %v1450_v61 = vpop.eup %1449  ;;  %v612_v15 = vmul.f32 0.0033333334, %v1448_v59  ;;  %v652_v16 = vpack.c.bf16 %v641_v58, %v640_v60 }
 0x25d   : > { %v1452_v6 = vpop.eup %1451  ;;  %v615_v21 = vmul.f32 0.0033333334, %v1450_v61  ;;  %v2148_v3 = vadd.f32 %v614_v62, %v2047_v36 }
 0x25e   : > { %v2145_v2 = vadd.f32 %v612_v15, %v2045_v33  ;;  %v613_v35 = vmul.f32 0.0033333334, %v1452_v6  ;;  %1278 = vmatprep.mubr.bf16.mxu0 %v652_v16 }
 0x25f   : > { %v2151_v42 = vadd.f32 %v615_v21, %v2049_v39  ;;  %1279 = vmatmul.mubr.bf16.gmra.mrb[24].mxu0 %v653_v28  ;;  %v646_v36 = vadd.f32 %v2148_v3, %v1954_v29 }
 0x260   : > { %v2154_v37 = vadd.f32 %v613_v35, %v2051_v41  ;;  %v644_v38 = vadd.f32 %v2145_v2, %v1941_v25 }
 0x261   : > { %v647_v43 = vadd.f32 %v2151_v42, %v1957_v30 }
 0x262   : > { %v645_v33 = vadd.f32 %v2154_v37, %v1944_v26 }
 0x263   : > { %v655_v40 = vpack.c.bf16 %v647_v43, %v646_v36 }
 0x264   : > { %v654_v46 = vpack.c.bf16 %v645_v33, %v644_v38 }
 0x266   : > { %1282 = vmatprep.mubr.bf16.mxu0 %v654_v46 }
 0x267   : > { %1283 = vmatmul.mubr.bf16.gmra.mrb[28].mxu0 %v655_v40 }
 0x322   : > { %v1272_v39 = vpop.f32.mrb[16].mxu0 }
 0x323   : > { %v699_v41 = vadd.f32 %v1272_v39, %v1971_v32  ;;  %v690_v7 = vpop.f32.mrb[17].mxu0 }
 0x324   : > { %v691_v52 = vadd.f32 %v1971_v32, %v690_v7  ;;  %v1273_v48 = vpop.f32.mrb[18].mxu0 }
 0x325   : > { %1453 = vtanh.f32 %v699_v41  ;;  %v702_v49 = vadd.f32 %v1273_v48, %v1971_v32  ;;  %v693_v54 = vpop.f32.mrb[19].mxu0 }
 0x326   : > { %1455 = vtanh.f32 %v691_v52  ;;  %v694_v0 = vadd.f32 %v1971_v32, %v693_v54 }
 0x327   : > { %1457 = vtanh.f32 %v702_v49 }
 0x328   : > { %1459 = vtanh.f32 %v694_v0 }
 0x32a   : > { %v1276_v55 = vpop.f32.mrb[20].mxu0 }
 0x32b   : > { %v715_v8 = vadd.f32 %v1276_v55, %v1971_v32  ;;  %v706_v50 = vpop.f32.mrb[21].mxu0 }
 0x32c   : > { %v707_v10 = vadd.f32 %v1971_v32, %v706_v50  ;;  %v1277_v56 = vpop.f32.mrb[22].mxu0 }
 0x32d   : > { %1461 = vtanh.f32 %v715_v8  ;;  %v718_v60 = vadd.f32 %v1277_v56, %v1971_v32  ;;  %v709_v58 = vpop.f32.mrb[23].mxu0 }
 0x32e   : > { %1463 = vtanh.f32 %v707_v10  ;;  %v710_v59 = vadd.f32 %v1971_v32, %v709_v58 }
 0x32f   : > { %v1454_v62 = vpop.eup %1453  ;;  %1465 = vtanh.f32 %v718_v60 }
 0x330   : > { %v1456_v63 = vpop.eup %1455  ;;  %v771_v61 = vmul.f32 0.0033333334, %v1454_v62  ;;  %1467 = vtanh.f32 %v710_v59 }
 0x331   : > { %v1458_v15 = vpop.eup %1457  ;;  %v769_v16 = vmul.f32 0.0033333334, %v1456_v63 }
 0x332   : > { %v1460_v6 = vpop.eup %1459  ;;  %v772_v21 = vmul.f32 0.0033333334, %v1458_v15  ;;  %v1280_v28 = vpop.f32.mrb[24].mxu0  ;;  %v2177_v36 = vadd.f32 %v771_v61, %v2081_v44 }
 0x333   : > { %v2173_v35 = vadd.f32 %v769_v16, %v2077_v34  ;;  %v770_v43 = vmul.f32 0.0033333334, %v1460_v6  ;;  %v731_v38 = vadd.f32 %v1280_v28, %v1971_v32  ;;  %v722_v33 = vpop.f32.mrb[25].mxu0 }
 0x334   : > { %v2180_v46 = vadd.f32 %v772_v21, %v2084_v45  ;;  %v723_v40 = vadd.f32 %v1971_v32, %v722_v33  ;;  %v1281_v39 = vpop.f32.mrb[26].mxu0  ;;  %v803_v54 = vadd.f32 %v2177_v36, %v1891_v11 }
 0x335   : > { %v2184_v41 = vadd.f32 %v770_v43, %v2088_v47  ;;  %1469 = vtanh.f32 %v731_v38  ;;  %v734_v34 = vadd.f32 %v1281_v39, %v1971_v32  ;;  %v725_v7 = vpop.f32.mrb[27].mxu0  ;;  %v801_v45 = vadd.f32 %v2173_v35, %v1857_v4 }
 0x336   : > { %v804_v52 = vadd.f32 %v2180_v46, %v1894_v12  ;;  %1471 = vtanh.f32 %v723_v40  ;;  %v726_v44 = vadd.f32 %v1971_v32, %v725_v7 }
 0x337   : > { %v1462_v48 = vpop.eup %1461  ;;  %1473 = vtanh.f32 %v734_v34  ;;  %v802_v49 = vadd.f32 %v2184_v41, %v1860_v5 }
 0x338   : > { %v1464_v47 = vpop.eup %1463  ;;  %v775_v0 = vmul.f32 0.0033333334, %v1462_v48  ;;  %1475 = vtanh.f32 %v726_v44  ;;  %v818_v56 = vpack.c.bf16 %v804_v52, %v803_v54 }
 0x339   : > { %v1466_v55 = vpop.eup %1465  ;;  %v773_v8 = vmul.f32 0.0033333334, %v1464_v47  ;;  %v817_v50 = vpack.c.bf16 %v802_v49, %v801_v45 }
 0x33a   : > { %v1468_v10 = vpop.eup %1467  ;;  %v776_v60 = vmul.f32 0.0033333334, %v1466_v55  ;;  %v1284_v58 = vpop.f32.mrb[28].mxu0  ;;  %v2201_v61 = vadd.f32 %v775_v0, %v2105_v22 }
 0x33b   : > { %v2197_v59 = vadd.f32 %v773_v8, %v2101_v1  ;;  %v774_v62 = vmul.f32 0.0033333334, %v1468_v10  ;;  %v747_v63 = vadd.f32 %v1284_v58, %v1971_v32  ;;  %v738_v5 = vpop.f32.mrb[29].mxu0  ;;  %1302 = vmatprep.mubr.bf16.mxu1 %v817_v50 }
 0x33c   : > { %v2204_v15 = vadd.f32 %v776_v60, %v2108_v27  ;;  %v739_v16 = vadd.f32 %v1971_v32, %v738_v5  ;;  %v1285_v6 = vpop.f32.mrb[30].mxu0  ;;  %1303 = vmatmul.mubr.bf16.vlgmr.msra.gmra.mrb[16].mxu1 %v818_v56  ;;  %v807_v39 = vadd.f32 %v2201_v61, %v1914_v17 }
 0x33d   : > { %v2208_v21 = vadd.f32 %v774_v62, %v2112_v31  ;;  %1477 = vtanh.f32 %v747_v63  ;;  %v750_v1 = vadd.f32 %v1285_v6, %v1971_v32  ;;  %v741_v28 = vpop.f32.mrb[31].mxu0  ;;  %v805_v27 = vadd.f32 %v2197_v59, %v1898_v13 }
 0x33e   : > { %1479 = vtanh.f32 %v739_v16  ;;  %v742_v43 = vadd.f32 %v1971_v32, %v741_v28  ;;  %v808_v22 = vadd.f32 %v2204_v15, %v1917_v18 }
 0x33f   : > { %v1470_v38 = vpop.eup %1469  ;;  %1481 = vtanh.f32 %v750_v1  ;;  %v806_v33 = vadd.f32 %v2208_v21, %v1901_v14 }
 0x340   : > { %v1472_v31 = vpop.eup %1471  ;;  %v779_v40 = vmul.f32 0.0033333334, %v1470_v38  ;;  %1483 = vtanh.f32 %v742_v43  ;;  %v820_v45 = vpack.c.bf16 %v808_v22, %v807_v39 }
 0x341   : > { %v1474_v34 = vpop.eup %1473  ;;  %v777_v7 = vmul.f32 0.0033333334, %v1472_v31  ;;  %v819_v52 = vpack.c.bf16 %v806_v33, %v805_v27 }
 0x342   : > { %v1476_v44 = vpop.eup %1475  ;;  %v780_v48 = vmul.f32 0.0033333334, %v1474_v34  ;;  %v2224_v54 = vadd.f32 %v779_v40, %v2128_v51 }
 0x343   : > { %v2221_v49 = vadd.f32 %v777_v7, %v2125_v57  ;;  %v778_v47 = vmul.f32 0.0033333334, %v1476_v44  ;;  %1306 = vmatprep.mubr.bf16.mxu1 %v819_v52 }
 0x344   : > { %v2227_v14 = vadd.f32 %v780_v48, %v2131_v9  ;;  %1307 = vmatmul.mubr.bf16.gmra.mrb[20].mxu1 %v820_v45  ;;  %v811_v9 = vadd.f32 %v2224_v54, %v1934_v23 }
 0x345   : > { %v2230_v0 = vadd.f32 %v778_v47, %v2134_v53  ;;  %v809_v57 = vadd.f32 %v2221_v49, %v1921_v19 }
 0x346   : > { %v812_v55 = vadd.f32 %v2227_v14, %v1937_v24 }
 0x347   : > { %v1478_v8 = vpop.eup %1477  ;;  %v810_v50 = vadd.f32 %v2230_v0, %v1924_v20 }
 0x348   : > { %v1480_v10 = vpop.eup %1479  ;;  %v783_v51 = vmul.f32 0.0033333334, %v1478_v8  ;;  %v822_v63 = vpack.c.bf16 %v812_v55, %v811_v9 }
 0x349   : > { %v1482_v56 = vpop.eup %1481  ;;  %v781_v60 = vmul.f32 0.0033333334, %v1480_v10  ;;  %v821_v58 = vpack.c.bf16 %v810_v50, %v809_v57 }
 0x34a   : > { %v1484_v53 = vpop.eup %1483  ;;  %v784_v62 = vmul.f32 0.0033333334, %v1482_v56  ;;  %v2244_v19 = vadd.f32 %v783_v51, %v2148_v3 }
 0x34b   : > { %v2241_v5 = vadd.f32 %v781_v60, %v2145_v2  ;;  %v782_v16 = vmul.f32 0.0033333334, %v1484_v53  ;;  %1310 = vmatprep.mubr.bf16.mxu1 %v821_v58 }
 0x34c   : > { %v2247_v20 = vadd.f32 %v784_v62, %v2151_v42  ;;  %1311 = vmatmul.mubr.bf16.gmra.mrb[24].mxu1 %v822_v63  ;;  %v815_v3 = vadd.f32 %v2244_v19, %v1954_v29 }
 0x34d   : > { %v2250_v6 = vadd.f32 %v782_v16, %v2154_v37  ;;  %v813_v28 = vadd.f32 %v2241_v5, %v1941_v25 }
 0x34e   : > { %v816_v1 = vadd.f32 %v2247_v20, %v1957_v30 }
 0x34f   : > { %v814_v2 = vadd.f32 %v2250_v6, %v1944_v26 }
 0x350   : > { %v824_v22 = vpack.c.bf16 %v816_v1, %v815_v3 }
 0x351   : > { %v823_v43 = vpack.c.bf16 %v814_v2, %v813_v28 }
 0x353   : > { %1314 = vmatprep.mubr.bf16.mxu1 %v823_v43 }
 0x354   : > { %1315 = vmatmul.mubr.bf16.gmra.mrb[28].mxu1 %v824_v22 }
 0x40f   : > { %v1304_v42 = vpop.f32.mrb[16].mxu1 }
 0x410   : > { %v868_v37 = vadd.f32 %v1304_v42, %v1971_v32  ;;  %v859_v38 = vpop.f32.mrb[17].mxu1 }
 0x411   : > { %v860_v27 = vadd.f32 %v1971_v32, %v859_v38  ;;  %v1305_v30 = vpop.f32.mrb[18].mxu1 }
 0x412   : > { %1485 = vtanh.f32 %v868_v37  ;;  %v871_v25 = vadd.f32 %v1305_v30, %v1971_v32  ;;  %v862_v33 = vpop.f32.mrb[19].mxu1 }
 0x413   : > { %1487 = vtanh.f32 %v860_v27  ;;  %v863_v26 = vadd.f32 %v1971_v32, %v862_v33 }
 0x414   : > { %1489 = vtanh.f32 %v871_v25 }
 0x415   : > { %1491 = vtanh.f32 %v863_v26 }
 0x417   : > { %v1308_v29 = vpop.f32.mrb[20].mxu1 }
 0x418   : > { %v884_v31 = vadd.f32 %v1308_v29, %v1971_v32  ;;  %v875_v40 = vpop.f32.mrb[21].mxu1 }
 0x419   : > { %v876_v39 = vadd.f32 %v1971_v32, %v875_v40  ;;  %v1309_v34 = vpop.f32.mrb[22].mxu1 }
 0x41a   : > { %1493 = vtanh.f32 %v884_v31  ;;  %v887_v7 = vadd.f32 %v1309_v34, %v1971_v32  ;;  %v878_v52 = vpop.f32.mrb[23].mxu1 }
 0x41b   : > { %1495 = vtanh.f32 %v876_v39  ;;  %v879_v44 = vadd.f32 %v1971_v32, %v878_v52 }
 0x41c   : > { %v1486_v48 = vpop.eup %1485  ;;  %1497 = vtanh.f32 %v887_v7 }
 0x41d   : > { %v1488_v45 = vpop.eup %1487  ;;  %v940_v47 = vmul.f32 0.0016666667, %v1486_v48  ;;  %1499 = vtanh.f32 %v879_v44  ;;  %v1518_v44 = vld [vmem:[%s1829_s9 + $0x28] sm:$0xff] }
 0x41e   : > { %v1490_v55 = vpop.eup %1489  ;;  %v938_v8 = vmul.f32 0.0016666667, %v1488_v45 }
 0x41f   : > { %v1492_v57 = vpop.eup %1491  ;;  %v956_v50 = vadd.f32 %v940_v47, %v2177_v36  ;;  %v941_v10 = vmul.f32 0.0016666667, %v1490_v55  ;;  %v1312_v51 = vpop.f32.mrb[24].mxu1 }
 0x420   : > { %v954_v9 = vadd.f32 %v938_v8, %v2173_v35  ;;  %v939_v56 = vmul.f32 0.0016666667, %v1492_v57  ;;  %v900_v60 = vadd.f32 %v1312_v51, %v1971_v32  ;;  %v891_v58 = vpop.f32.mrb[25].mxu1  ;;  %v1519_v51 = vld [vmem:[%s1829_s9 + $0x40] sm:$0xff] }
 0x421   : > { %v972_v53 = vadd.f32 %v956_v50, %v1891_v11  ;;  %v957_v62 = vadd.f32 %v941_v10, %v2180_v46  ;;  %v892_v63 = vadd.f32 %v1971_v32, %v891_v58  ;;  %v1313_v16 = vpop.f32.mrb[26].mxu1 }
 0x422   : > { %v970_v1 = vadd.f32 %v954_v9, %v1857_v4  ;;  %v955_v36 = vadd.f32 %v939_v56, %v2184_v41  ;;  %1501 = vtanh.f32 %v900_v60  ;;  %v903_v28 = vadd.f32 %v1313_v16, %v1971_v32  ;;  %v894_v35 = vpop.f32.mrb[27].mxu1  ;;  %v1517_v41 = vld [vmem:[%s1829_s9 + $0x8] sm:$0xff] }
 0x423   : > { %988 = vst [vmem:[%s2279_s4 + $0x10] sm:$0xff] %v972_v53  ;;  %v973_v11 = vadd.f32 %v957_v62, %v1894_v12  ;;  %1503 = vtanh.f32 %v892_v63  ;;  %v895_v46 = vadd.f32 %v1971_v32, %v894_v35 }
 0x424   : > { %v1494_v4 = vpop.eup %1493  ;;  %986 = vst [vmem:[%s2279_s4] sm:$0xff] %v970_v1  ;;  %v971_v2 = vadd.f32 %v1517_v41, %v955_v36  ;;  %1505 = vtanh.f32 %v903_v28  ;;  %v1521_v36 = vld [vmem:[%s1829_s9 + $0x70] sm:$0xff] }
 0x425   : > { %v1496_v3 = vpop.eup %1495  ;;  %989 = vst [vmem:[%s2279_s4 + $0x18] sm:$0xff] %v973_v11  ;;  %v944_v43 = vmul.f32 0.0016666667, %v1494_v4  ;;  %1507 = vtanh.f32 %v895_v46  ;;  %v1522_v11 = vld [vmem:[%s1829_s9 + $0x60] sm:$0xff]  ;;  %v1523_v4 = vld [vmem:[%s1829_s9 + $0x78] sm:$0xff] }
 0x426   : > { %v1498_v22 = vpop.eup %1497  ;;  %987 = vst [vmem:[%s2279_s4 + $0x8] sm:$0xff] %v971_v2  ;;  %v942_v42 = vmul.f32 0.0016666667, %v1496_v3 }
 0x427   : > { %v1500_v37 = vpop.eup %1499  ;;  %v960_v38 = vadd.f32 %v944_v43, %v2201_v61  ;;  %v945_v12 = vmul.f32 0.0016666667, %v1498_v22  ;;  %v1316_v27 = vpop.f32.mrb[28].mxu1 }
 0x428   : > { %v958_v30 = vadd.f32 %v942_v42, %v2197_v59  ;;  %v943_v25 = vmul.f32 0.0016666667, %v1500_v37  ;;  %v916_v33 = vadd.f32 %v1316_v27, %v1971_v32  ;;  %v907_v26 = vpop.f32.mrb[29].mxu1 }
 0x429   : > { %v976_v29 = vadd.f32 %v960_v38, %v1914_v17  ;;  %v961_v31 = vadd.f32 %v945_v12, %v2204_v15  ;;  %v908_v40 = vadd.f32 %v1971_v32, %v907_v26  ;;  %v1317_v39 = vpop.f32.mrb[30].mxu1 }
 0x42a   : > { %v974_v61 = vadd.f32 %v958_v30, %v1898_v13  ;;  %v959_v34 = vadd.f32 %v943_v25, %v2208_v21  ;;  %1509 = vtanh.f32 %v916_v33  ;;  %v919_v59 = vadd.f32 %v1317_v39, %v1971_v32  ;;  %v910_v7 = vpop.f32.mrb[31].mxu1 }
 0x42b   : > { %992 = vst [vmem:[%s2279_s4 + $0x30] sm:$0xff] %v976_v29  ;;  %v977_v52 = vadd.f32 %v961_v31, %v1917_v18  ;;  %1511 = vtanh.f32 %v908_v40  ;;  %v911_v17 = vadd.f32 %v1971_v32, %v910_v7 }
 0x42c   : > { %v1502_v15 = vpop.eup %1501  ;;  %990 = vst [vmem:[%s2279_s4 + $0x20] sm:$0xff] %v974_v61  ;;  %v975_v48 = vadd.f32 %v1518_v44, %v959_v34  ;;  %1513 = vtanh.f32 %v919_v59 }
 0x42d   : > { %v1504_v13 = vpop.eup %1503  ;;  %993 = vst [vmem:[%s2279_s4 + $0x38] sm:$0xff] %v977_v52  ;;  %v948_v21 = vmul.f32 0.0016666667, %v1502_v15  ;;  %1515 = vtanh.f32 %v911_v17 }
 0x42e   : > { %v1506_v45 = vpop.eup %1505  ;;  %991 = vst [vmem:[%s2279_s4 + $0x28] sm:$0xff] %v975_v48  ;;  %v946_v47 = vmul.f32 0.0016666667, %v1504_v13 }
 0x42f   : > { %v1508_v18 = vpop.eup %1507  ;;  %v964_v55 = vadd.f32 %v948_v21, %v2224_v54  ;;  %v949_v32 = vmul.f32 0.0016666667, %v1506_v45  ;;  %v1520_v54 = vld [vmem:[%s1829_s9 + $0x48] sm:$0xff] }
 0x430   : > { %v962_v8 = vadd.f32 %v946_v47, %v2221_v49  ;;  %v947_v57 = vmul.f32 0.0016666667, %v1508_v18 }
 0x431   : > { %v980_v50 = vadd.f32 %v964_v55, %v1934_v23  ;;  %v965_v10 = vadd.f32 %v949_v32, %v2227_v14 }
 0x432   : > { %v978_v9 = vadd.f32 %v1519_v51, %v962_v8  ;;  %v963_v56 = vadd.f32 %v947_v57, %v2230_v0 }
 0x433   : > { %996 = vst [vmem:[%s2279_s4 + $0x50] sm:$0xff] %v980_v50  ;;  %v981_v60 = vadd.f32 %v965_v10, %v1937_v24 }
 0x434   : > { %v1510_v58 = vpop.eup %1509  ;;  %994 = vst [vmem:[%s2279_s4 + $0x40] sm:$0xff] %v978_v9  ;;  %v979_v49 = vadd.f32 %v1520_v54, %v963_v56 }
 0x435   : > { %v1512_v53 = vpop.eup %1511  ;;  %997 = vst [vmem:[%s2279_s4 + $0x58] sm:$0xff] %v981_v60  ;;  %v952_v23 = vmul.f32 0.0016666667, %v1510_v58 }
 0x436   : > { %v1514_v62 = vpop.eup %1513  ;;  %995 = vst [vmem:[%s2279_s4 + $0x48] sm:$0xff] %v979_v49  ;;  %v950_v14 = vmul.f32 0.0016666667, %v1512_v53 }
 0x437   : > { %v1516_v0 = vpop.eup %1515  ;;  %v968_v63 = vadd.f32 %v952_v23, %v2244_v19  ;;  %v953_v24 = vmul.f32 0.0016666667, %v1514_v62 }
 0x438   : > { %v966_v16 = vadd.f32 %v950_v14, %v2241_v5  ;;  %v951_v1 = vmul.f32 0.0016666667, %v1516_v0  ;;  %v1524_v5 = vld [vmem:[%s1829_s9 + $0x68] sm:$0xff] }
 0x439   : > { %v984_v28 = vadd.f32 %v1521_v36, %v968_v63  ;;  %v969_v35 = vadd.f32 %v953_v24, %v2247_v20 }
 0x43a   : > { %v982_v46 = vadd.f32 %v1522_v11, %v966_v16  ;;  %v967_v19 = vadd.f32 %v951_v1, %v2250_v6 }
 0x43b   : > { %1000 = vst [vmem:[%s2279_s4 + $0x70] sm:$0xff] %v984_v28  ;;  %v985_v41 = vadd.f32 %v1523_v4, %v969_v35 }
 0x43c   : > { %998 = vst [vmem:[%s2279_s4 + $0x60] sm:$0xff] %v982_v46  ;;  %v983_v20 = vadd.f32 %v1524_v5, %v967_v19 }
 0x43d   : > { %1001 = vst [vmem:[%s2279_s4 + $0x78] sm:$0xff] %v985_v41 }
 0x43e   : > { %999 = vst [vmem:[%s2279_s4 + $0x68] sm:$0xff] %v983_v20 }
 0x43f   : > { %1596 = shalt.err (!%p1593_p7)
}
 0x440   : > { %s1597_s30 = scalar_lea.hbm %s2329_s16, 2048  ;;  %s1601_s8 = scalar_lea.hbm %s2382_s3, 4096 }
 0x441   : > { %p1598_p9 = scmp.ne.s32.totalorder %s2329_s16, %s1597_s30  ;;  %p1602_p5 = scmp.lt.u32.totalorder %s2329_s16, %s2382_s3 }
 0x442   : > { %p1603_p11 = scmp.lt.u32.totalorder %s1601_s8, %s1597_s30  ;;  %p1605_p4 = scmp.lt.u32.totalorder %s1597_s30, %s2329_s16 }
 0x443   : > { %p1599_p2 = pnand %p1598_p9, %p1775_p12 }
 0x444   : > { %p1604_p1 = por %p1603_p11, %p1602_p5 }
 0x445   : > { %p1600_p0 = pneg %p1599_p2 }
 0x446   : > { %p1606_p6 = por %p1605_p4, %p1604_p1 }
 0x448   : > { %p1607_p8 = pnand %p1606_p6, %p1600_p0 }
 0x44a   : > { %1610 = shalt.err (!%p1607_p8)
}
 0x44b   : > { %s1662_s20 = smov 128   ;;  %s1663_s4 = smov 8  }
 0x44c   : > { %1324 = dma.vmem_to_hbm [thread:$0]  (%p1775_p12), %s2331_s26, 2048, %s2329_s16, %s1003_s11, %s1662_s20, %s1662_s20, %s1663_s4  }
 0x44d PF: > { %s1031_s25 = sand.u32 1, %s1641_s12   ;;  %p2397_p10 = scmp.ne.s32.totalorder %s2387_s19, 0 }
 0x44e   : > { %p2398_p13 = scmp.ge.s32.totalorder %s1653_s15, 2  ;;  %s1032_s5 = scalar_lea.sflag [#allocation4], %s1031_s25 }
 0x450   : > { %p1335_p3 = pnand %p2398_p13, %p2397_p10 }
 0x452   : > { %1636 = dma.done.wait (!%p1335_p3), %s1032_s5, 2048  }
 0x453   : > { %1638 = vsyncadd (!%p1335_p3), %s1032_s5, 4294965248  ;;  %p17_p7 = scmp.ge.s32.totalorder %s1740_s24, 4   ;;  %s2399_s12 = smov %s1645_s13 }
 0x454   : > { %s2400_s13 = smov %s1649_s14  ;;  %s2401_s14 = smov %s1771_s17 }
 0x455   : > { %s2402_s15 = smov %s1740_s24  ;;  %19 = sbr.rel (!%p17_p7) target bundleno = 6 (0x6), region = 81 }
 0x45c   :  { %1037 = vsyncpa [#allocation3], 1 }
 0x45d   :  { %1039 = vsyncpa [#allocation3 + $0x1], 1 }
 0x45e   :  { %1040 = vsyncpa [#allocation6], 1 }
 0x45f   :  { %1041 = vsyncpa [#allocation4], 1 }
 0x460   :  { %1043 = vsyncpa [#allocation4 + $0x1], 1 }

// kernel: tpu_custom_call.1
= control target key start
LH: loop header
LB: loop body
LE: loop exit
PB: predicated region body
PF: predicated region fallthrough
CT: control target
= control target key end

     0   :  { %8 = vsyncpa [#allocation3], 0  ;;  %s2379_s0 = inlined_call_operand.hbm [shape: f32[256,128], index: 0, kind: input, shape index: {}]   ;;  %s2380_s1 = inlined_call_operand.hbm [shape: bf16[128,128], index: 1, kind: input, shape index: {}]   ;;  %s2381_s2 = inlined_call_operand.vmem [shape: f32[1,128], index: 2, kind: input, shape index: {}]   ;;  %s2382_s3 = inlined_call_operand.hbm [shape: f32[256,128], index: 3, kind: output, shape index: {}]  }
   0x1   :  { %10 = vsyncpa [#allocation3 + $0x1], 0 }
   0x2   :  { %11 = vsyncpa [#allocation6], 0 }
   0x3   :  { %12 = vsyncpa [#allocation4], 0 }
   0x4   :  { %14 = vsyncpa [#allocation4 + $0x1], 0  ;;  %s1684_s12 = smov 0   ;;  %s1686_s13 = smov 0  }
   0x5   :  { %s1688_s14 = smov 0   ;;  %s1690_s15 = smov 0  }
   0x6 LB: > { %s1705_s16 = sadd.s32 4294967295, %s1653_s15   ;;  %s1099_s17 = sadd.s32 4294967294, %s1653_s15   ;;  %s1653_s15 = sphi %s1690_s15, %s2402_s15   ;;  %s1649_s14 = sphi %s1688_s14, %s2401_s14   ;;  %s1645_s13 = sphi %s1686_s13, %s2400_s13   ;;  %s1641_s12 = sphi %s1684_s12, %s2399_s12  }
   0x7   : > { %p40_p0 = scmp.ne.s32.totalorder %s1645_s13, %s1641_s12  ;;  %p2383_p1 = scmp.eq.s32.totalorder %s1705_s16, 0 }
   0x8   : > { %p112_p3 = scmp.eq.s32.totalorder %s1099_s17, 1  ;;  %p1100_p5 = scmp.ge.s32.totalorder %s1653_s15, 1 }
   0x9   : > { %p1714_p4 = por %p2383_p1, %p40_p0  ;;  %p119_p7 = scmp.lt.s32.totalorder %s1653_s15, 3 }
   0xa   : > { %p1719_p6 = por %p112_p3, %p40_p0  ;;  %s1655_s21 = smov [#allocation5]  }
   0xb   : > { %s2386_s18 = scalar_select %p1714_p4, 1, 0 }
   0xc   : > { %s2387_s19 = scalar_select %p1719_p6, 1, 0 }
   0xd   : > { %p1724_p8 = pnand %p1100_p5, %p119_p7  ;;  %s131_s22 = sshll.u32 %s1655_s21, 4  ;;  %s1728_s22 = int_to_ptr.vmem [resolvable:$true] %s131_s22 }
   0xe   : > { %s1740_s24 = sadd.s32 1, %s1653_s15   ;;  %s27_s25 = sadd.s32 1, %s1649_s14 }
   0xf   : > { %s2388_s20 = scalar_select %p1724_p8, 1, 0 }
  0x10   : > { %p1326_p9 = pneg %p1724_p8  ;;  %s24_s26 = ssub.s32 %s1653_s15, %s1740_s24 }
  0x11   : > { %s1525_s29 = scalar_lea.hbm %s2380_s1, 1024 }
  0x12   : > { %p1735_p11 = pnand %p1326_p9, %p2383_p1  ;;  %p1526_p12 = scmp.ne.s32.totalorder %s2380_s1, %s1525_s29 }
  0x13   : > { %p1532_p5 = scmp.lt.u32.totalorder %s1525_s29, %s2380_s1 }
  0x14   : > { %p1527_p13 = pneg %p1735_p11 }
  0x16   : > { %p1528_p0 = pnand %p1527_p13, %p1526_p12 }
  0x18   : > { %p1529_p3 = pneg %p1528_p0 }
  0x1a   : > { %p1534_p7 = pnand %p1532_p5, %p1529_p3 }
  0x1c   : > { %1537 = shalt.err (!%p1534_p7)
}
  0x1d   : > { %s1538_s7 = scalar_lea.vmem %s1728_s22, 1024  ;;  %p1546_p2 = scmp.lt.s32.totalorder %s1728_s22, %s1728_s22 }
  0x1e   : > { %p1539_p9 = scmp.ne.s32.totalorder %s1728_s22, %s1538_s7  ;;  %p1547_p6 = scmp.lt.s32.totalorder %s1538_s7, %s1538_s7 }
  0x20   : > { %p1541_p10 = pnand %p1539_p9, %p1527_p13  ;;  %p1548_p4 = por %p1547_p6, %p1546_p2 }
  0x22   : > { %p1542_p1 = pneg %p1541_p10 }
  0x24   : > { %p1549_p8 = pnand %p1548_p4, %p1542_p1 }
  0x26   : > { %1552 = shalt.err (!%p1549_p8)
}
  0x27   : > { %s1656_s8 = smov 64   ;;  %s1657_s9 = smov 4  }
  0x28   : > { %1329 = dma.hbm_to_vmem [thread:$0]  (!%p1735_p11), %s2380_s1, 1024, %s1728_s22, [#allocation6], %s1656_s8, %s1656_s8, %s1657_s9  }
  0x29   : > { %p25_p2 = scmp.eq.s32.totalorder %s24_s26, 0  ;;  %p34_p1 = scmp.ne.s32.totalorder %s1649_s14, %s1645_s13 }
  0x2a   : > { %p35_p4 = scmp.eq.s32.totalorder %s1653_s15, 0  ;;  %p1339_p6 = scmp.lt.s32.totalorder %s1653_s15, 2 }
  0x2b   : > { %s1771_s17 = scalar_select %p25_p2, %s1649_s14, %s27_s25  }
  0x2c   : > { %p36_p8 = por %p35_p4, %p34_p1  ;;  %p2390_p10 = scmp.eq.s32.totalorder %s1705_s16, 1 }
  0x2d   : > { %s148_s27 = sand.u32 1, %s1649_s14   ;;  %s1124_s28 = sshll.u32 %s1653_s15, 11 }
  0x2e   : > { %p1775_p12 = por %p2390_p10, %p34_p1  ;;  %s1103_s29 = sshll.u32 %s148_s27, 7 }
  0x2f   : > { %s1784_s4 = scalar_lea.hbm %s2379_s0, %s1124_s28  ;;  %s152_s22 = scalar_lea.vmem [#allocation2], %s1103_s29 }
  0x30   : > { %s159_s25 = sshll.u32 %s152_s22, 4  ;;  %p1786_p11 = pnand %p1339_p6, %p36_p8  ;;  %s1790_s25 = int_to_ptr.vmem [resolvable:$true] %s159_s25 }
  0x31   : > { %s1792_s5 = scalar_lea.sflag [#allocation3], %s148_s27  ;;  %s1553_s6 = scalar_lea.hbm %s1784_s4, 2048 }
  0x32   : > { %p1554_p13 = scmp.ne.s32.totalorder %s1784_s4, %s1553_s6  ;;  %p1555_p0 = pneg %p1786_p11 }
  0x33   : > { %s1558_s9 = scalar_lea.hbm %s2379_s0, 4096  ;;  %p1559_p7 = scmp.lt.u32.totalorder %s1784_s4, %s2379_s0 }
  0x34   : > { %p1556_p3 = pnand %p1555_p0, %p1554_p13  ;;  %p1560_p9 = scmp.lt.u32.totalorder %s1558_s9, %s1553_s6 }
  0x35   : > { %p1562_p1 = scmp.lt.u32.totalorder %s1553_s6, %s1784_s4 }
  0x36   : > { %p1557_p5 = pneg %p1556_p3  ;;  %p1561_p2 = por %p1560_p9, %p1559_p7 }
  0x38   : > { %p1563_p4 = por %p1562_p1, %p1561_p2 }
  0x3a   : > { %p1564_p6 = pnand %p1563_p4, %p1557_p5 }
  0x3c   : > { %1567 = shalt.err (!%p1564_p6)
}
  0x3d   : > { %s1568_s27 = scalar_lea.vmem %s1790_s25, 2048  ;;  %s1658_s28 = smov [#allocation2]  }
  0x3e   : > { %p1569_p8 = scmp.ne.s32.totalorder %s1790_s25, %s1568_s27  ;;  %s1573_s29 = sshll.u32 %s1658_s28, 4  ;;  %s1574_s29 = int_to_ptr.vmem [resolvable:$false] %s1573_s29 }
  0x3f   : > { %s1575_s23 = scalar_lea.vmem %s1574_s29, 4096  ;;  %p1576_p3 = scmp.lt.s32.totalorder %s1790_s25, %s1574_s29 }
  0x40   : > { %p1571_p10 = pnand %p1569_p8, %p1555_p0  ;;  %p1577_p7 = scmp.lt.s32.totalorder %s1575_s23, %s1568_s27 }
  0x42   : > { %p1572_p13 = pneg %p1571_p10  ;;  %p1578_p9 = por %p1577_p7, %p1576_p3 }
  0x44   : > { %p1579_p2 = pnand %p1578_p9, %p1572_p13 }
  0x46   : > { %1582 = shalt.err (!%p1579_p2)
}
  0x47   : > { %s1659_s30 = smov 128   ;;  %s1660_s22 = smov 8  }
  0x48   : > { %1333 = dma.hbm_to_vmem [thread:$0]  (!%p1786_p11), %s1784_s4, 2048, %s1790_s25, %s1792_s5, %s1659_s30, %s1659_s30, %s1660_s22  }
  0x49   : > { %p2393_p0 = scmp.ne.s32.totalorder %s2388_s20, 0 }
  0x4a   : > { %s1823_s6 = sand.u32 (!%p2393_p0), 1, %s1645_s13   ;;  %p2394_p5 = scmp.ne.s32.totalorder (!%p2393_p0), %s2386_s18, 0 }
  0x4b   : > { %171 = sbr.rel (%p2393_p0) target bundleno = 1101 (0x44d), region = 32  ;;  %s1107_s7 = sshll.u32 (!%p2393_p0), %s1823_s6, 7 }
  0x4c   : > { %s174_s8 = scalar_lea.sflag (!%p2393_p0), [#allocation3], %s1823_s6  ;;  %s1829_s9 = scalar_lea.vmem (!%p2393_p0), [#allocation2], %s1107_s7 }
  0x52   : > { %1628 = dma.done.wait (%p2394_p5), %s174_s8, 2048  }
  0x53   : > { %1630 = vsyncadd (%p2394_p5), %s174_s8, 4294965248  ;;  %p2395_p11 = scmp.eq.s32.totalorder %s1705_s16, 0 }
  0x55   : > { %1632 = dma.done.wait (%p2395_p11), [#allocation6], 1024   ;;  %p2396_p1 = pmov %p2395_p11 }
  0x56   : > { %v1839_v0 = vld [vmem:[#allocation5] sm:$0xff]   ;;  %v1841_v1 = vld [vmem:[#allocation5 + $0x8] sm:$0xff]   ;;  %v1848_v2 = vld [vmem:[#allocation5 + $0x10] sm:$0xff]   ;;  %s2279_s4 = scalar_lea.vmem [#allocation7], %s1107_s7  ;;  %s1125_s25 = sshll.u32 %s1705_s16, 11 }
  0x57   : > { %1634 = vsyncadd (%p2396_p1), [#allocation6], 4294966272  ;;  %1190 = vmatprep.subr.bf16.mxu0 %v1839_v0  ;;  %1222 = vmatprep.subr.bf16.mxu1 %v1839_v0  ;;  %v1854_v3 = vld [vmem:[#allocation5 + $0x18] sm:$0xff]   ;;  %v1857_v4 = vld [vmem:[%s1829_s9] sm:$0xff]  ;;  %s1016_s26 = sshll.u32 %s2279_s4, 4  ;;  %s2329_s16 = scalar_lea.hbm %s2382_s3, %s1125_s25  ;;  %s2331_s26 = int_to_ptr.vmem [resolvable:$true] %s1016_s26 }
  0x58   : > { %1191 = vmatpush3.bf16.msra.mxu0 %v1839_v0  ;;  %1223 = vmatpush3.bf16.msra.mxu1 %v1839_v0  ;;  %v1860_v5 = vld [vmem:[%s1829_s9 + $0x8] sm:$0xff]  ;;  %v1867_v7 = vld [vmem:[#allocation5 + $0x20] sm:$0xff]   ;;  %v1879_v9 = vld [vmem:[#allocation5 + $0x30] sm:$0xff]   ;;  %s1003_s11 = scalar_lea.sflag [#allocation4], %s1823_s6  ;;  %s1583_s27 = scalar_lea.vmem %s2331_s26, 2048 }
  0x59   : > { %1192 = vmatprep.subr.bf16.mxu0 %v1841_v1  ;;  %1224 = vmatprep.subr.bf16.mxu1 %v1841_v1  ;;  %v262_v6 = vpack.c.bf16 %v1860_v5, %v1857_v4  ;;  %v1873_v8 = vld [vmem:[#allocation5 + $0x28] sm:$0xff]   ;;  %v1885_v10 = vld [vmem:[#allocation5 + $0x38] sm:$0xff]   ;;  %v1891_v11 = vld [vmem:[%s1829_s9 + $0x10] sm:$0xff]  ;;  %p1584_p4 = scmp.ne.s32.totalorder %s2331_s26, %s1583_s27  ;;  %s1661_s28 = smov [#allocation7]  }
  0x5a   : > { %v1894_v12 = vld [vmem:[%s1829_s9 + $0x18] sm:$0xff]  ;;  %v1898_v13 = vld [vmem:[%s1829_s9 + $0x20] sm:$0xff]  ;;  %v1901_v14 = vld [vmem:[%s1829_s9 + $0x28] sm:$0xff]  ;;  %s1587_s29 = sshll.u32 %s1661_s28, 4  ;;  %s1588_s29 = int_to_ptr.vmem [resolvable:$false] %s1587_s29 }
  0x5b   : > { %1206 = vmatprep.mubr.bf16.mxu0 %v262_v6  ;;  %v263_v15 = vpack.c.bf16 %v1894_v12, %v1891_v11  ;;  %v264_v16 = vpack.c.bf16 %v1901_v14, %v1898_v13  ;;  %v1914_v17 = vld [vmem:[%s1829_s9 + $0x30] sm:$0xff]  ;;  %v1917_v18 = vld [vmem:[%s1829_s9 + $0x38] sm:$0xff]  ;;  %v1921_v19 = vld [vmem:[%s1829_s9 + $0x40] sm:$0xff]  ;;  %p1585_p6 = pnand %p1584_p4, %p1775_p12  ;;  %s1589_s23 = scalar_lea.vmem %s1588_s29, 4096 }
  0x5c   : > { %1193 = vmatpush3.bf16.msra.mxu0 %v1841_v1  ;;  %1225 = vmatpush3.bf16.msra.mxu1 %v1841_v1  ;;  %v1924_v20 = vld [vmem:[%s1829_s9 + $0x48] sm:$0xff]  ;;  %v265_v21 = vpack.c.bf16 %v1917_v18, %v1914_v17  ;;  %v1934_v23 = vld [vmem:[%s1829_s9 + $0x50] sm:$0xff]  ;;  %v1937_v24 = vld [vmem:[%s1829_s9 + $0x58] sm:$0xff]  ;;  %p1590_p10 = scmp.lt.s32.totalorder %s2331_s26, %s1588_s29  ;;  %p1591_p13 = scmp.lt.s32.totalorder %s1589_s23, %s1583_s27 }
  0x5d   : > { %1194 = vmatprep.subr.bf16.mxu0 %v1848_v2  ;;  %1226 = vmatprep.subr.bf16.mxu1 %v1848_v2  ;;  %v266_v22 = vpack.c.bf16 %v1924_v20, %v1921_v19  ;;  %v1941_v25 = vld [vmem:[%s1829_s9 + $0x60] sm:$0xff]  ;;  %v1944_v26 = vld [vmem:[%s1829_s9 + $0x68] sm:$0xff]  ;;  %v267_v27 = vpack.c.bf16 %v1937_v24, %v1934_v23  ;;  %v1954_v29 = vld [vmem:[%s1829_s9 + $0x70] sm:$0xff]  ;;  %p1586_p8 = pneg %p1585_p6 }
  0x5e   : > { %v268_v28 = vpack.c.bf16 %v1944_v26, %v1941_v25  ;;  %v1957_v30 = vld [vmem:[%s1829_s9 + $0x78] sm:$0xff]  ;;  %v1971_v32 = vld [vmem:[%s2381_s2] ss:$0 sm:$0xff]  ;;  %p1592_p3 = por %p1591_p13, %p1590_p10 }
  0x5f   : > { %v269_v31 = vpack.c.bf16 %v1957_v30, %v1954_v29 }
  0x60   : > { %1195 = vmatpush3.bf16.msra.mxu0 %v1848_v2  ;;  %1227 = vmatpush3.bf16.msra.mxu1 %v1848_v2  ;;  %p1593_p7 = pnand %p1592_p3, %p1586_p8 }
  0x61   : > { %1196 = vmatprep.subr.bf16.mxu0 %v1854_v3  ;;  %1228 = vmatprep.subr.bf16.mxu1 %v1854_v3 }
  0x64   : > { %1197 = vmatpush3.bf16.msra.mxu0 %v1854_v3  ;;  %1229 = vmatpush3.bf16.msra.mxu1 %v1854_v3 }
  0x65   : > { %1198 = vmatprep.subr.bf16.mxu0 %v1867_v7  ;;  %1230 = vmatprep.subr.bf16.mxu1 %v1867_v7 }
  0x68   : > { %1199 = vmatpush3.bf16.msra.mxu0 %v1867_v7  ;;  %1231 = vmatpush3.bf16.msra.mxu1 %v1867_v7 }
  0x69   : > { %1200 = vmatprep.subr.bf16.mxu0 %v1873_v8  ;;  %1232 = vmatprep.subr.bf16.mxu1 %v1873_v8 }
  0x6c   : > { %1201 = vmatpush3.bf16.msra.mxu0 %v1873_v8  ;;  %1233 = vmatpush3.bf16.msra.mxu1 %v1873_v8 }
  0x6d   : > { %1202 = vmatprep.subr.bf16.mxu0 %v1879_v9  ;;  %1234 = vmatprep.subr.bf16.mxu1 %v1879_v9 }
  0x70   : > { %1203 = vmatpush3.bf16.msra.mxu0 %v1879_v9  ;;  %1235 = vmatpush3.bf16.msra.mxu1 %v1879_v9 }
  0x71   : > { %1204 = vmatprep.subr.bf16.mxu0 %v1885_v10  ;;  %1236 = vmatprep.subr.bf16.mxu1 %v1885_v10 }
  0x74   : > { %1205 = vmatpush3.bf16.msra.mxu0 %v1885_v10  ;;  %1237 = vmatpush3.bf16.msra.mxu1 %v1885_v10 }
  0x75   : > { %1254 = vmatprep.subr.bf16.mxu0 %v1839_v0  ;;  %1286 = vmatprep.subr.bf16.mxu1 %v1839_v0 }
  0x77   : > { %1207 = vmatmul.mubr.bf16.vlgmr.msra.gmra.mrb[0].mxu0 %v263_v15 }
  0x78   : > { %1210 = vmatprep.mubr.bf16.mxu0 %v264_v16  ;;  %1255 = vmatpush3.bf16.msra.mxu0 %v1839_v0 }
  0x79   : > { %1256 = vmatprep.subr.bf16.mxu0 %v1841_v1 }
  0x7c   : > { %1257 = vmatpush3.bf16.msra.mxu0 %v1841_v1 }
  0x7d   : > { %1258 = vmatprep.subr.bf16.mxu0 %v1848_v2 }
  0x7f   : > { %1211 = vmatmul.mubr.bf16.gmra.mrb[4].mxu0 %v265_v21 }
  0x80   : > { %1214 = vmatprep.mubr.bf16.mxu0 %v266_v22  ;;  %1259 = vmatpush3.bf16.msra.mxu0 %v1848_v2 }
  0x81   : > { %1260 = vmatprep.subr.bf16.mxu0 %v1854_v3 }
  0x84   : > { %1261 = vmatpush3.bf16.msra.mxu0 %v1854_v3 }
  0x85   : > { %1262 = vmatprep.subr.bf16.mxu0 %v1867_v7 }
  0x87   : > { %1215 = vmatmul.mubr.bf16.gmra.mrb[8].mxu0 %v267_v27 }
  0x88   : > { %1218 = vmatprep.mubr.bf16.mxu0 %v268_v28  ;;  %1263 = vmatpush3.bf16.msra.mxu0 %v1867_v7 }
  0x89   : > { %1264 = vmatprep.subr.bf16.mxu0 %v1873_v8 }
  0x8c   : > { %1265 = vmatpush3.bf16.msra.mxu0 %v1873_v8 }
  0x8d   : > { %1266 = vmatprep.subr.bf16.mxu0 %v1879_v9 }
  0x8f   : > { %1219 = vmatmul.mubr.bf16.gmra.mrb[12].mxu0 %v269_v31 }
  0x90   : > { %1267 = vmatpush3.bf16.msra.mxu0 %v1879_v9 }
  0x91   : > { %1268 = vmatprep.subr.bf16.mxu0 %v1885_v10 }
  0x94   : > { %1269 = vmatpush3.bf16.msra.mxu0 %v1885_v10 }
 0x14a   : > { %v1208_v33 = vpop.f32.mrb[0].mxu0 }
 0x14b   : > { %v361_v34 = vadd.f32 %v1208_v33, %v1971_v32  ;;  %v352_v35 = vpop.f32.mrb[1].mxu0 }
 0x14c   : > { %v353_v36 = vadd.f32 %v1971_v32, %v352_v35  ;;  %v1209_v37 = vpop.f32.mrb[2].mxu0 }
 0x14d   : > { %1389 = vtanh.f32 %v361_v34  ;;  %v364_v38 = vadd.f32 %v1209_v37, %v1971_v32  ;;  %v355_v39 = vpop.f32.mrb[3].mxu0 }
 0x14e   : > { %1391 = vtanh.f32 %v353_v36  ;;  %v356_v40 = vadd.f32 %v1971_v32, %v355_v39 }
 0x14f   : > { %1393 = vtanh.f32 %v364_v38 }
 0x150   : > { %1395 = vtanh.f32 %v356_v40 }
 0x152   : > { %v1212_v41 = vpop.f32.mrb[4].mxu0 }
 0x153   : > { %v377_v42 = vadd.f32 %v1212_v41, %v1971_v32  ;;  %v368_v43 = vpop.f32.mrb[5].mxu0 }
 0x154   : > { %v369_v44 = vadd.f32 %v1971_v32, %v368_v43  ;;  %v1213_v45 = vpop.f32.mrb[6].mxu0 }
 0x155   : > { %1397 = vtanh.f32 %v377_v42  ;;  %v380_v46 = vadd.f32 %v1213_v45, %v1971_v32  ;;  %v371_v47 = vpop.f32.mrb[7].mxu0 }
 0x156   : > { %1399 = vtanh.f32 %v369_v44  ;;  %v372_v48 = vadd.f32 %v1971_v32, %v371_v47 }
 0x157   : > { %v1390_v49 = vpop.eup %1389  ;;  %1401 = vtanh.f32 %v380_v46 }
 0x158   : > { %v1392_v50 = vpop.eup %1391  ;;  %1403 = vtanh.f32 %v372_v48  ;;  %v1983_v54 = vmul.f32 0.0016666667, %v1390_v49 }
 0x159   : > { %v1394_v51 = vpop.eup %1393  ;;  %v1981_v52 = vmul.f32 0.0016666667, %v1392_v50 }
 0x15a   : > { %v1396_v53 = vpop.eup %1395  ;;  %v1985_v55 = vmul.f32 0.0016666667, %v1394_v51  ;;  %v1216_v56 = vpop.f32.mrb[8].mxu0  ;;  %v465_v21 = vadd.f32 %v1983_v54, %v1891_v11 }
 0x15b   : > { %v1987_v57 = vmul.f32 0.0016666667, %v1396_v53  ;;  %v393_v58 = vadd.f32 %v1216_v56, %v1971_v32  ;;  %v384_v59 = vpop.f32.mrb[9].mxu0  ;;  %v463_v15 = vadd.f32 %v1981_v52, %v1857_v4 }
 0x15c   : > { %v466_v60 = vadd.f32 %v1985_v55, %v1894_v12  ;;  %v385_v61 = vadd.f32 %v1971_v32, %v384_v59  ;;  %v1217_v62 = vpop.f32.mrb[10].mxu0 }
 0x15d   : > { %1405 = vtanh.f32 %v393_v58  ;;  %v396_v63 = vadd.f32 %v1217_v62, %v1971_v32  ;;  %v387_v6 = vpop.f32.mrb[11].mxu0  ;;  %v464_v16 = vadd.f32 %v1987_v57, %v1860_v5 }
 0x15e   : > { %1407 = vtanh.f32 %v385_v61  ;;  %v388_v22 = vadd.f32 %v1971_v32, %v387_v6  ;;  %v480_v33 = vpack.c.bf16 %v466_v60, %v465_v21 }
 0x15f   : > { %v1398_v27 = vpop.eup %1397  ;;  %1409 = vtanh.f32 %v396_v63  ;;  %v479_v28 = vpack.c.bf16 %v464_v16, %v463_v15 }
 0x160   : > { %v1400_v31 = vpop.eup %1399  ;;  %1411 = vtanh.f32 %v388_v22  ;;  %v2003_v37 = vmul.f32 0.0016666667, %v1398_v27 }
 0x161   : > { %v1402_v34 = vpop.eup %1401  ;;  %v2001_v35 = vmul.f32 0.0016666667, %v1400_v31  ;;  %1238 = vmatprep.mubr.bf16.mxu1 %v479_v28 }
 0x162   : > { %v1404_v36 = vpop.eup %1403  ;;  %v2005_v38 = vmul.f32 0.0016666667, %v1402_v34  ;;  %v1220_v39 = vpop.f32.mrb[12].mxu0  ;;  %1239 = vmatmul.mubr.bf16.vlgmr.msra.gmra.mrb[0].mxu1 %v480_v33 }
 0x163   : > { %v2007_v40 = vmul.f32 0.0016666667, %v1404_v36  ;;  %v409_v41 = vadd.f32 %v1220_v39, %v1971_v32  ;;  %v400_v42 = vpop.f32.mrb[13].mxu0  ;;  %1287 = vmatpush3.bf16.msra.mxu1 %v1839_v0  ;;  %v467_v46 = vadd.f32 %v2001_v35, %v1898_v13  ;;  %v469_v0 = vadd.f32 %v2003_v37, %v1914_v17 }
 0x164   : > { %v470_v43 = vadd.f32 %v2005_v38, %v1917_v18  ;;  %v401_v44 = vadd.f32 %v1971_v32, %v400_v42  ;;  %v1221_v45 = vpop.f32.mrb[14].mxu0  ;;  %1288 = vmatprep.subr.bf16.mxu1 %v1841_v1 }
 0x165   : > { %v468_v47 = vadd.f32 %v2007_v40, %v1901_v14  ;;  %1413 = vtanh.f32 %v409_v41  ;;  %v412_v48 = vadd.f32 %v1221_v45, %v1971_v32  ;;  %v403_v49 = vpop.f32.mrb[15].mxu0 }
 0x166   : > { %1415 = vtanh.f32 %v401_v44  ;;  %v404_v50 = vadd.f32 %v1971_v32, %v403_v49  ;;  %v482_v58 = vpack.c.bf16 %v470_v43, %v469_v0 }
 0x167   : > { %v1406_v51 = vpop.eup %1405  ;;  %1417 = vtanh.f32 %v412_v48  ;;  %v481_v53 = vpack.c.bf16 %v468_v47, %v467_v46  ;;  %1289 = vmatpush3.bf16.msra.mxu1 %v1841_v1 }
 0x168   : > { %v1408_v56 = vpop.eup %1407  ;;  %1419 = vtanh.f32 %v404_v50  ;;  %1290 = vmatprep.subr.bf16.mxu1 %v1848_v2  ;;  %v2027_v62 = vmul.f32 0.0016666667, %v1406_v51 }
 0x169   : > { %v1410_v59 = vpop.eup %1409  ;;  %v2025_v60 = vmul.f32 0.0016666667, %v1408_v56  ;;  %1242 = vmatprep.mubr.bf16.mxu1 %v481_v53 }
 0x16a   : > { %v1412_v61 = vpop.eup %1411  ;;  %v2029_v63 = vmul.f32 0.0016666667, %v1410_v59  ;;  %1243 = vmatmul.mubr.bf16.gmra.mrb[4].mxu1 %v482_v58  ;;  %v473_v21 = vadd.f32 %v2027_v62, %v1934_v23 }
 0x16b   : > { %v2031_v6 = vmul.f32 0.0016666667, %v1412_v61  ;;  %1291 = vmatpush3.bf16.msra.mxu1 %v1848_v2  ;;  %v471_v15 = vadd.f32 %v2025_v60, %v1921_v19 }
 0x16c   : > { %v474_v1 = vadd.f32 %v2029_v63, %v1937_v24  ;;  %1292 = vmatprep.subr.bf16.mxu1 %v1854_v3 }
 0x16d   : > { %v472_v16 = vadd.f32 %v2031_v6, %v1924_v20 }
 0x16e   : > { %v484_v2 = vpack.c.bf16 %v474_v1, %v473_v21 }
 0x16f   : > { %v1414_v22 = vpop.eup %1413  ;;  %v483_v27 = vpack.c.bf16 %v472_v16, %v471_v15  ;;  %1293 = vmatpush3.bf16.msra.mxu1 %v1854_v3 }
 0x170   : > { %v1416_v28 = vpop.eup %1415  ;;  %1294 = vmatprep.subr.bf16.mxu1 %v1867_v7  ;;  %v2047_v36 = vmul.f32 0.0016666667, %v1414_v22 }
 0x171   : > { %v1418_v31 = vpop.eup %1417  ;;  %v2045_v33 = vmul.f32 0.0016666667, %v1416_v28  ;;  %1246 = vmatprep.mubr.bf16.mxu1 %v483_v27 }
 0x172   : > { %v1420_v34 = vpop.eup %1419  ;;  %v2049_v39 = vmul.f32 0.0016666667, %v1418_v31  ;;  %1247 = vmatmul.mubr.bf16.gmra.mrb[8].mxu1 %v484_v2  ;;  %v477_v44 = vadd.f32 %v2047_v36, %v1954_v29 }
 0x173   : > { %v2051_v41 = vmul.f32 0.0016666667, %v1420_v34  ;;  %1295 = vmatpush3.bf16.msra.mxu1 %v1867_v7  ;;  %v475_v42 = vadd.f32 %v2045_v33, %v1941_v25 }
 0x174   : > { %v478_v3 = vadd.f32 %v2049_v39, %v1957_v30  ;;  %1296 = vmatprep.subr.bf16.mxu1 %v1873_v8 }
 0x175   : > { %v476_v43 = vadd.f32 %v2051_v41, %v1944_v26 }
 0x176   : > { %v486_v46 = vpack.c.bf16 %v478_v3, %v477_v44 }
 0x177   : > { %v485_v45 = vpack.c.bf16 %v476_v43, %v475_v42  ;;  %1297 = vmatpush3.bf16.msra.mxu1 %v1873_v8 }
 0x178   : > { %1298 = vmatprep.subr.bf16.mxu1 %v1879_v9 }
 0x179   : > { %1250 = vmatprep.mubr.bf16.mxu1 %v485_v45 }
 0x17a   : > { %1251 = vmatmul.mubr.bf16.gmra.mrb[12].mxu1 %v486_v46 }
 0x17b   : > { %1299 = vmatpush3.bf16.msra.mxu1 %v1879_v9 }
 0x17c   : > { %1300 = vmatprep.subr.bf16.mxu1 %v1885_v10 }
 0x17f   : > { %1301 = vmatpush3.bf16.msra.mxu1 %v1885_v10 }
 0x235   : > { %v1240_v7 = vpop.f32.mrb[0].mxu1 }
 0x236   : > { %v530_v47 = vadd.f32 %v1240_v7, %v1971_v32  ;;  %v521_v48 = vpop.f32.mrb[1].mxu1 }
 0x237   : > { %v522_v49 = vadd.f32 %v1971_v32, %v521_v48  ;;  %v1241_v0 = vpop.f32.mrb[2].mxu1 }
 0x238   : > { %1421 = vtanh.f32 %v530_v47  ;;  %v533_v8 = vadd.f32 %v1241_v0, %v1971_v32  ;;  %v524_v50 = vpop.f32.mrb[3].mxu1 }
 0x239   : > { %1423 = vtanh.f32 %v522_v49  ;;  %v525_v51 = vadd.f32 %v1971_v32, %v524_v50 }
 0x23a   : > { %1425 = vtanh.f32 %v533_v8 }
 0x23b   : > { %1427 = vtanh.f32 %v525_v51 }
 0x23d   : > { %v1244_v9 = vpop.f32.mrb[4].mxu1 }
 0x23e   : > { %v546_v53 = vadd.f32 %v1244_v9, %v1971_v32  ;;  %v537_v10 = vpop.f32.mrb[5].mxu1 }
 0x23f   : > { %v538_v56 = vadd.f32 %v1971_v32, %v537_v10  ;;  %v1245_v58 = vpop.f32.mrb[6].mxu1 }
 0x240   : > { %1429 = vtanh.f32 %v546_v53  ;;  %v549_v59 = vadd.f32 %v1245_v58, %v1971_v32  ;;  %v540_v61 = vpop.f32.mrb[7].mxu1 }
 0x241   : > { %1431 = vtanh.f32 %v538_v56  ;;  %v541_v1 = vadd.f32 %v1971_v32, %v540_v61 }
 0x242   : > { %v1422_v15 = vpop.eup %1421  ;;  %1433 = vtanh.f32 %v549_v59 }
 0x243   : > { %v1424_v16 = vpop.eup %1423  ;;  %v602_v21 = vmul.f32 0.0033333334, %v1422_v15  ;;  %1435 = vtanh.f32 %v541_v1 }
 0x244   : > { %v1426_v22 = vpop.eup %1425  ;;  %v600_v27 = vmul.f32 0.0033333334, %v1424_v16 }
 0x245   : > { %v1428_v28 = vpop.eup %1427  ;;  %v603_v2 = vmul.f32 0.0033333334, %v1426_v22  ;;  %v1248_v31 = vpop.f32.mrb[8].mxu1  ;;  %v2081_v44 = vadd.f32 %v602_v21, %v1983_v54 }
 0x246   : > { %v2077_v34 = vadd.f32 %v600_v27, %v1981_v52  ;;  %v601_v3 = vmul.f32 0.0033333334, %v1428_v28  ;;  %v562_v42 = vadd.f32 %v1248_v31, %v1971_v32  ;;  %v553_v43 = vpop.f32.mrb[9].mxu1 }
 0x247   : > { %v2084_v45 = vadd.f32 %v603_v2, %v1985_v55  ;;  %v554_v46 = vadd.f32 %v1971_v32, %v553_v43  ;;  %v1249_v7 = vpop.f32.mrb[10].mxu1  ;;  %v634_v50 = vadd.f32 %v2081_v44, %v1891_v11 }
 0x248   : > { %v2088_v47 = vadd.f32 %v601_v3, %v1987_v57  ;;  %1437 = vtanh.f32 %v562_v42  ;;  %v565_v52 = vadd.f32 %v1249_v7, %v1971_v32  ;;  %v556_v48 = vpop.f32.mrb[11].mxu1  ;;  %v632_v55 = vadd.f32 %v2077_v34, %v1857_v4 }
 0x249   : > { %v635_v49 = vadd.f32 %v2084_v45, %v1894_v12  ;;  %1439 = vtanh.f32 %v554_v46  ;;  %v557_v54 = vadd.f32 %v1971_v32, %v556_v48 }
 0x24a   : > { %v1430_v0 = vpop.eup %1429  ;;  %1441 = vtanh.f32 %v565_v52  ;;  %v633_v8 = vadd.f32 %v2088_v47, %v1860_v5 }
 0x24b   : > { %v1432_v57 = vpop.eup %1431  ;;  %v606_v51 = vmul.f32 0.0033333334, %v1430_v0  ;;  %1443 = vtanh.f32 %v557_v54  ;;  %v649_v58 = vpack.c.bf16 %v635_v49, %v634_v50 }
 0x24c   : > { %v1434_v9 = vpop.eup %1433  ;;  %v604_v53 = vmul.f32 0.0033333334, %v1432_v57  ;;  %v648_v10 = vpack.c.bf16 %v633_v8, %v632_v55 }
 0x24d   : > { %v1436_v56 = vpop.eup %1435  ;;  %v607_v59 = vmul.f32 0.0033333334, %v1434_v9  ;;  %v1252_v61 = vpop.f32.mrb[12].mxu1  ;;  %v2105_v22 = vadd.f32 %v606_v51, %v2003_v37 }
 0x24e   : > { %v2101_v1 = vadd.f32 %v604_v53, %v2001_v35  ;;  %v605_v15 = vmul.f32 0.0033333334, %v1436_v56  ;;  %v578_v16 = vadd.f32 %v1252_v61, %v1971_v32  ;;  %v569_v21 = vpop.f32.mrb[13].mxu1  ;;  %1270 = vmatprep.mubr.bf16.mxu0 %v648_v10 }
 0x24f   : > { %v2108_v27 = vadd.f32 %v607_v59, %v2005_v38  ;;  %v570_v28 = vadd.f32 %v1971_v32, %v569_v21  ;;  %v1253_v2 = vpop.f32.mrb[14].mxu1  ;;  %1271 = vmatmul.mubr.bf16.vlgmr.msra.gmra.mrb[16].mxu0 %v649_v58  ;;  %v638_v52 = vadd.f32 %v2105_v22, %v1914_v17 }
 0x250   : > { %v2112_v31 = vadd.f32 %v605_v15, %v2007_v40  ;;  %1445 = vtanh.f32 %v578_v16  ;;  %v581_v35 = vadd.f32 %v1253_v2, %v1971_v32  ;;  %v572_v3 = vpop.f32.mrb[15].mxu1  ;;  %v636_v38 = vadd.f32 %v2101_v1, %v1898_v13 }
 0x251   : > { %1447 = vtanh.f32 %v570_v28  ;;  %v573_v42 = vadd.f32 %v1971_v32, %v572_v3  ;;  %v639_v37 = vadd.f32 %v2108_v27, %v1917_v18 }
 0x252   : > { %v1438_v43 = vpop.eup %1437  ;;  %1449 = vtanh.f32 %v581_v35  ;;  %v637_v46 = vadd.f32 %v2112_v31, %v1901_v14 }
 0x253   : > { %v1440_v40 = vpop.eup %1439  ;;  %v610_v7 = vmul.f32 0.0033333334, %v1438_v43  ;;  %1451 = vtanh.f32 %v573_v42  ;;  %v651_v8 = vpack.c.bf16 %v639_v37, %v638_v52 }
 0x254   : > { %v1442_v48 = vpop.eup %1441  ;;  %v608_v49 = vmul.f32 0.0033333334, %v1440_v40  ;;  %v650_v54 = vpack.c.bf16 %v637_v46, %v636_v38 }
 0x255   : > { %v1444_v0 = vpop.eup %1443  ;;  %v611_v55 = vmul.f32 0.0033333334, %v1442_v48  ;;  %v2128_v51 = vadd.f32 %v610_v7, %v2027_v62 }
 0x256   : > { %v2125_v57 = vadd.f32 %v608_v49, %v2025_v60  ;;  %v609_v50 = vmul.f32 0.0033333334, %v1444_v0  ;;  %1274 = vmatprep.mubr.bf16.mxu0 %v650_v54 }
 0x257   : > { %v2131_v9 = vadd.f32 %v611_v55, %v2029_v63  ;;  %1275 = vmatmul.mubr.bf16.gmra.mrb[20].mxu0 %v651_v8  ;;  %v642_v63 = vadd.f32 %v2128_v51, %v1934_v23 }
 0x258   : > { %v2134_v53 = vadd.f32 %v609_v50, %v2031_v6  ;;  %v640_v60 = vadd.f32 %v2125_v57, %v1921_v19 }
 0x259   : > { %v643_v10 = vadd.f32 %v2131_v9, %v1937_v24 }
 0x25a   : > { %v1446_v56 = vpop.eup %1445  ;;  %v641_v58 = vadd.f32 %v2134_v53, %v1924_v20 }
 0x25b   : > { %v1448_v59 = vpop.eup %1447  ;;  %v614_v62 = vmul.f32 0.0033333334, %v1446_v56  ;;  %v653_v28 = vpack.c.bf16 %v643_v10, %v642_v63 }
 0x25c   : > { %v1450_v61 = vpop.eup %1449  ;;  %v612_v15 = vmul.f32 0.0033333334, %v1448_v59  ;;  %v652_v16 = vpack.c.bf16 %v641_v58, %v640_v60 }
 0x25d   : > { %v1452_v6 = vpop.eup %1451  ;;  %v615_v21 = vmul.f32 0.0033333334, %v1450_v61  ;;  %v2148_v3 = vadd.f32 %v614_v62, %v2047_v36 }
 0x25e   : > { %v2145_v2 = vadd.f32 %v612_v15, %v2045_v33  ;;  %v613_v35 = vmul.f32 0.0033333334, %v1452_v6  ;;  %1278 = vmatprep.mubr.bf16.mxu0 %v652_v16 }
 0x25f   : > { %v2151_v42 = vadd.f32 %v615_v21, %v2049_v39  ;;  %1279 = vmatmul.mubr.bf16.gmra.mrb[24].mxu0 %v653_v28  ;;  %v646_v36 = vadd.f32 %v2148_v3, %v1954_v29 }
 0x260   : > { %v2154_v37 = vadd.f32 %v613_v35, %v2051_v41  ;;  %v644_v38 = vadd.f32 %v2145_v2, %v1941_v25 }
 0x261   : > { %v647_v43 = vadd.f32 %v2151_v42, %v1957_v30 }
 0x262   : > { %v645_v33 = vadd.f32 %v2154_v37, %v1944_v26 }
 0x263   : > { %v655_v40 = vpack.c.bf16 %v647_v43, %v646_v36 }
 0x264   : > { %v654_v46 = vpack.c.bf16 %v645_v33, %v644_v38 }
 0x266   : > { %1282 = vmatprep.mubr.bf16.mxu0 %v654_v46 }
 0x267   : > { %1283 = vmatmul.mubr.bf16.gmra.mrb[28].mxu0 %v655_v40 }
 0x322   : > { %v1272_v39 = vpop.f32.mrb[16].mxu0 }
 0x323   : > { %v699_v41 = vadd.f32 %v1272_v39, %v1971_v32  ;;  %v690_v7 = vpop.f32.mrb[17].mxu0 }
 0x324   : > { %v691_v52 = vadd.f32 %v1971_v32, %v690_v7  ;;  %v1273_v48 = vpop.f32.mrb[18].mxu0 }
 0x325   : > { %1453 = vtanh.f32 %v699_v41  ;;  %v702_v49 = vadd.f32 %v1273_v48, %v1971_v32  ;;  %v693_v54 = vpop.f32.mrb[19].mxu0 }
 0x326   : > { %1455 = vtanh.f32 %v691_v52  ;;  %v694_v0 = vadd.f32 %v1971_v32, %v693_v54 }
 0x327   : > { %1457 = vtanh.f32 %v702_v49 }
 0x328   : > { %1459 = vtanh.f32 %v694_v0 }
 0x32a   : > { %v1276_v55 = vpop.f32.mrb[20].mxu0 }
 0x32b   : > { %v715_v8 = vadd.f32 %v1276_v55, %v1971_v32  ;;  %v706_v50 = vpop.f32.mrb[21].mxu0 }
 0x32c   : > { %v707_v10 = vadd.f32 %v1971_v32, %v706_v50  ;;  %v1277_v56 = vpop.f32.mrb[22].mxu0 }
 0x32d   : > { %1461 = vtanh.f32 %v715_v8  ;;  %v718_v60 = vadd.f32 %v1277_v56, %v1971_v32  ;;  %v709_v58 = vpop.f32.mrb[23].mxu0 }
 0x32e   : > { %1463 = vtanh.f32 %v707_v10  ;;  %v710_v59 = vadd.f32 %v1971_v32, %v709_v58 }
 0x32f   : > { %v1454_v62 = vpop.eup %1453  ;;  %1465 = vtanh.f32 %v718_v60 }
 0x330   : > { %v1456_v63 = vpop.eup %1455  ;;  %v771_v61 = vmul.f32 0.0033333334, %v1454_v62  ;;  %1467 = vtanh.f32 %v710_v59 }
 0x331   : > { %v1458_v15 = vpop.eup %1457  ;;  %v769_v16 = vmul.f32 0.0033333334, %v1456_v63 }
 0x332   : > { %v1460_v6 = vpop.eup %1459  ;;  %v772_v21 = vmul.f32 0.0033333334, %v1458_v15  ;;  %v1280_v28 = vpop.f32.mrb[24].mxu0  ;;  %v2177_v36 = vadd.f32 %v771_v61, %v2081_v44 }
 0x333   : > { %v2173_v35 = vadd.f32 %v769_v16, %v2077_v34  ;;  %v770_v43 = vmul.f32 0.0033333334, %v1460_v6  ;;  %v731_v38 = vadd.f32 %v1280_v28, %v1971_v32  ;;  %v722_v33 = vpop.f32.mrb[25].mxu0 }
 0x334   : > { %v2180_v46 = vadd.f32 %v772_v21, %v2084_v45  ;;  %v723_v40 = vadd.f32 %v1971_v32, %v722_v33  ;;  %v1281_v39 = vpop.f32.mrb[26].mxu0  ;;  %v803_v54 = vadd.f32 %v2177_v36, %v1891_v11 }
 0x335   : > { %v2184_v41 = vadd.f32 %v770_v43, %v2088_v47  ;;  %1469 = vtanh.f32 %v731_v38  ;;  %v734_v34 = vadd.f32 %v1281_v39, %v1971_v32  ;;  %v725_v7 = vpop.f32.mrb[27].mxu0  ;;  %v801_v45 = vadd.f32 %v2173_v35, %v1857_v4 }
 0x336   : > { %v804_v52 = vadd.f32 %v2180_v46, %v1894_v12  ;;  %1471 = vtanh.f32 %v723_v40  ;;  %v726_v44 = vadd.f32 %v1971_v32, %v725_v7 }
 0x337   : > { %v1462_v48 = vpop.eup %1461  ;;  %1473 = vtanh.f32 %v734_v34  ;;  %v802_v49 = vadd.f32 %v2184_v41, %v1860_v5 }
 0x338   : > { %v1464_v47 = vpop.eup %1463  ;;  %v775_v0 = vmul.f32 0.0033333334, %v1462_v48  ;;  %1475 = vtanh.f32 %v726_v44  ;;  %v818_v56 = vpack.c.bf16 %v804_v52, %v803_v54 }
 0x339   : > { %v1466_v55 = vpop.eup %1465  ;;  %v773_v8 = vmul.f32 0.0033333334, %v1464_v47  ;;  %v817_v50 = vpack.c.bf16 %v802_v49, %v801_v45 }
 0x33a   : > { %v1468_v10 = vpop.eup %1467  ;;  %v776_v60 = vmul.f32 0.0033333334, %v1466_v55  ;;  %v1284_v58 = vpop.f32.mrb[28].mxu0  ;;  %v2201_v61 = vadd.f32 %v775_v0, %v2105_v22 }
 0x33b   : > { %v2197_v59 = vadd.f32 %v773_v8, %v2101_v1  ;;  %v774_v62 = vmul.f32 0.0033333334, %v1468_v10  ;;  %v747_v63 = vadd.f32 %v1284_v58, %v1971_v32  ;;  %v738_v5 = vpop.f32.mrb[29].mxu0  ;;  %1302 = vmatprep.mubr.bf16.mxu1 %v817_v50 }
 0x33c   : > { %v2204_v15 = vadd.f32 %v776_v60, %v2108_v27  ;;  %v739_v16 = vadd.f32 %v1971_v32, %v738_v5  ;;  %v1285_v6 = vpop.f32.mrb[30].mxu0  ;;  %1303 = vmatmul.mubr.bf16.vlgmr.msra.gmra.mrb[16].mxu1 %v818_v56  ;;  %v807_v39 = vadd.f32 %v2201_v61, %v1914_v17 }
 0x33d   : > { %v2208_v21 = vadd.f32 %v774_v62, %v2112_v31  ;;  %1477 = vtanh.f32 %v747_v63  ;;  %v750_v1 = vadd.f32 %v1285_v6, %v1971_v32  ;;  %v741_v28 = vpop.f32.mrb[31].mxu0  ;;  %v805_v27 = vadd.f32 %v2197_v59, %v1898_v13 }
 0x33e   : > { %1479 = vtanh.f32 %v739_v16  ;;  %v742_v43 = vadd.f32 %v1971_v32, %v741_v28  ;;  %v808_v22 = vadd.f32 %v2204_v15, %v1917_v18 }
 0x33f   : > { %v1470_v38 = vpop.eup %1469  ;;  %1481 = vtanh.f32 %v750_v1  ;;  %v806_v33 = vadd.f32 %v2208_v21, %v1901_v14 }
 0x340   : > { %v1472_v31 = vpop.eup %1471  ;;  %v779_v40 = vmul.f32 0.0033333334, %v1470_v38  ;;  %1483 = vtanh.f32 %v742_v43  ;;  %v820_v45 = vpack.c.bf16 %v808_v22, %v807_v39 }
 0x341   : > { %v1474_v34 = vpop.eup %1473  ;;  %v777_v7 = vmul.f32 0.0033333334, %v1472_v31  ;;  %v819_v52 = vpack.c.bf16 %v806_v33, %v805_v27 }
 0x342   : > { %v1476_v44 = vpop.eup %1475  ;;  %v780_v48 = vmul.f32 0.0033333334, %v1474_v34  ;;  %v2224_v54 = vadd.f32 %v779_v40, %v2128_v51 }
 0x343   : > { %v2221_v49 = vadd.f32 %v777_v7, %v2125_v57  ;;  %v778_v47 = vmul.f32 0.0033333334, %v1476_v44  ;;  %1306 = vmatprep.mubr.bf16.mxu1 %v819_v52 }
 0x344   : > { %v2227_v14 = vadd.f32 %v780_v48, %v2131_v9  ;;  %1307 = vmatmul.mubr.bf16.gmra.mrb[20].mxu1 %v820_v45  ;;  %v811_v9 = vadd.f32 %v2224_v54, %v1934_v23 }
 0x345   : > { %v2230_v0 = vadd.f32 %v778_v47, %v2134_v53  ;;  %v809_v57 = vadd.f32 %v2221_v49, %v1921_v19 }
 0x346   : > { %v812_v55 = vadd.f32 %v2227_v14, %v1937_v24 }
 0x347   : > { %v1478_v8 = vpop.eup %1477  ;;  %v810_v50 = vadd.f32 %v2230_v0, %v1924_v20 }
 0x348   : > { %v1480_v10 = vpop.eup %1479  ;;  %v783_v51 = vmul.f32 0.0033333334, %v1478_v8  ;;  %v822_v63 = vpack.c.bf16 %v812_v55, %v811_v9 }
 0x349   : > { %v1482_v56 = vpop.eup %1481  ;;  %v781_v60 = vmul.f32 0.0033333334, %v1480_v10  ;;  %v821_v58 = vpack.c.bf16 %v810_v50, %v809_v57 }
 0x34a   : > { %v1484_v53 = vpop.eup %1483  ;;  %v784_v62 = vmul.f32 0.0033333334, %v1482_v56  ;;  %v2244_v19 = vadd.f32 %v783_v51, %v2148_v3 }
 0x34b   : > { %v2241_v5 = vadd.f32 %v781_v60, %v2145_v2  ;;  %v782_v16 = vmul.f32 0.0033333334, %v1484_v53  ;;  %1310 = vmatprep.mubr.bf16.mxu1 %v821_v58 }
 0x34c   : > { %v2247_v20 = vadd.f32 %v784_v62, %v2151_v42  ;;  %1311 = vmatmul.mubr.bf16.gmra.mrb[24].mxu1 %v822_v63  ;;  %v815_v3 = vadd.f32 %v2244_v19, %v1954_v29 }
 0x34d   : > { %v2250_v6 = vadd.f32 %v782_v16, %v2154_v37  ;;  %v813_v28 = vadd.f32 %v2241_v5, %v1941_v25 }
 0x34e   : > { %v816_v1 = vadd.f32 %v2247_v20, %v1957_v30 }
 0x34f   : > { %v814_v2 = vadd.f32 %v2250_v6, %v1944_v26 }
 0x350   : > { %v824_v22 = vpack.c.bf16 %v816_v1, %v815_v3 }
 0x351   : > { %v823_v43 = vpack.c.bf16 %v814_v2, %v813_v28 }
 0x353   : > { %1314 = vmatprep.mubr.bf16.mxu1 %v823_v43 }
 0x354   : > { %1315 = vmatmul.mubr.bf16.gmra.mrb[28].mxu1 %v824_v22 }
 0x40f   : > { %v1304_v42 = vpop.f32.mrb[16].mxu1 }
 0x410   : > { %v868_v37 = vadd.f32 %v1304_v42, %v1971_v32  ;;  %v859_v38 = vpop.f32.mrb[17].mxu1 }
 0x411   : > { %v860_v27 = vadd.f32 %v1971_v32, %v859_v38  ;;  %v1305_v30 = vpop.f32.mrb[18].mxu1 }
 0x412   : > { %1485 = vtanh.f32 %v868_v37  ;;  %v871_v25 = vadd.f32 %v1305_v30, %v1971_v32  ;;  %v862_v33 = vpop.f32.mrb[19].mxu1 }
 0x413   : > { %1487 = vtanh.f32 %v860_v27  ;;  %v863_v26 = vadd.f32 %v1971_v32, %v862_v33 }
 0x414   : > { %1489 = vtanh.f32 %v871_v25 }
 0x415   : > { %1491 = vtanh.f32 %v863_v26 }
 0x417   : > { %v1308_v29 = vpop.f32.mrb[20].mxu1 }
 0x418   : > { %v884_v31 = vadd.f32 %v1308_v29, %v1971_v32  ;;  %v875_v40 = vpop.f32.mrb[21].mxu1 }
 0x419   : > { %v876_v39 = vadd.f32 %v1971_v32, %v875_v40  ;;  %v1309_v34 = vpop.f32.mrb[22].mxu1 }
 0x41a   : > { %1493 = vtanh.f32 %v884_v31  ;;  %v887_v7 = vadd.f32 %v1309_v34, %v1971_v32  ;;  %v878_v52 = vpop.f32.mrb[23].mxu1 }
 0x41b   : > { %1495 = vtanh.f32 %v876_v39  ;;  %v879_v44 = vadd.f32 %v1971_v32, %v878_v52 }
 0x41c   : > { %v1486_v48 = vpop.eup %1485  ;;  %1497 = vtanh.f32 %v887_v7 }
 0x41d   : > { %v1488_v45 = vpop.eup %1487  ;;  %v940_v47 = vmul.f32 0.0016666667, %v1486_v48  ;;  %1499 = vtanh.f32 %v879_v44  ;;  %v1518_v44 = vld [vmem:[%s1829_s9 + $0x28] sm:$0xff] }
 0x41e   : > { %v1490_v55 = vpop.eup %1489  ;;  %v938_v8 = vmul.f32 0.0016666667, %v1488_v45 }
 0x41f   : > { %v1492_v57 = vpop.eup %1491  ;;  %v956_v50 = vadd.f32 %v940_v47, %v2177_v36  ;;  %v941_v10 = vmul.f32 0.0016666667, %v1490_v55  ;;  %v1312_v51 = vpop.f32.mrb[24].mxu1 }
 0x420   : > { %v954_v9 = vadd.f32 %v938_v8, %v2173_v35  ;;  %v939_v56 = vmul.f32 0.0016666667, %v1492_v57  ;;  %v900_v60 = vadd.f32 %v1312_v51, %v1971_v32  ;;  %v891_v58 = vpop.f32.mrb[25].mxu1  ;;  %v1519_v51 = vld [vmem:[%s1829_s9 + $0x40] sm:$0xff] }
 0x421   : > { %v972_v53 = vadd.f32 %v956_v50, %v1891_v11  ;;  %v957_v62 = vadd.f32 %v941_v10, %v2180_v46  ;;  %v892_v63 = vadd.f32 %v1971_v32, %v891_v58  ;;  %v1313_v16 = vpop.f32.mrb[26].mxu1 }
 0x422   : > { %v970_v1 = vadd.f32 %v954_v9, %v1857_v4  ;;  %v955_v36 = vadd.f32 %v939_v56, %v2184_v41  ;;  %1501 = vtanh.f32 %v900_v60  ;;  %v903_v28 = vadd.f32 %v1313_v16, %v1971_v32  ;;  %v894_v35 = vpop.f32.mrb[27].mxu1  ;;  %v1517_v41 = vld [vmem:[%s1829_s9 + $0x8] sm:$0xff] }
 0x423   : > { %988 = vst [vmem:[%s2279_s4 + $0x10] sm:$0xff] %v972_v53  ;;  %v973_v11 = vadd.f32 %v957_v62, %v1894_v12  ;;  %1503 = vtanh.f32 %v892_v63  ;;  %v895_v46 = vadd.f32 %v1971_v32, %v894_v35 }
 0x424   : > { %v1494_v4 = vpop.eup %1493  ;;  %986 = vst [vmem:[%s2279_s4] sm:$0xff] %v970_v1  ;;  %v971_v2 = vadd.f32 %v1517_v41, %v955_v36  ;;  %1505 = vtanh.f32 %v903_v28  ;;  %v1521_v36 = vld [vmem:[%s1829_s9 + $0x70] sm:$0xff] }
 0x425   : > { %v1496_v3 = vpop.eup %1495  ;;  %989 = vst [vmem:[%s2279_s4 + $0x18] sm:$0xff] %v973_v11  ;;  %v944_v43 = vmul.f32 0.0016666667, %v1494_v4  ;;  %1507 = vtanh.f32 %v895_v46  ;;  %v1522_v11 = vld [vmem:[%s1829_s9 + $0x60] sm:$0xff]  ;;  %v1523_v4 = vld [vmem:[%s1829_s9 + $0x78] sm:$0xff] }
 0x426   : > { %v1498_v22 = vpop.eup %1497  ;;  %987 = vst [vmem:[%s2279_s4 + $0x8] sm:$0xff] %v971_v2  ;;  %v942_v42 = vmul.f32 0.0016666667, %v1496_v3 }
 0x427   : > { %v1500_v37 = vpop.eup %1499  ;;  %v960_v38 = vadd.f32 %v944_v43, %v2201_v61  ;;  %v945_v12 = vmul.f32 0.0016666667, %v1498_v22  ;;  %v1316_v27 = vpop.f32.mrb[28].mxu1 }
 0x428   : > { %v958_v30 = vadd.f32 %v942_v42, %v2197_v59  ;;  %v943_v25 = vmul.f32 0.0016666667, %v1500_v37  ;;  %v916_v33 = vadd.f32 %v1316_v27, %v1971_v32  ;;  %v907_v26 = vpop.f32.mrb[29].mxu1 }
 0x429   : > { %v976_v29 = vadd.f32 %v960_v38, %v1914_v17  ;;  %v961_v31 = vadd.f32 %v945_v12, %v2204_v15  ;;  %v908_v40 = vadd.f32 %v1971_v32, %v907_v26  ;;  %v1317_v39 = vpop.f32.mrb[30].mxu1 }
 0x42a   : > { %v974_v61 = vadd.f32 %v958_v30, %v1898_v13  ;;  %v959_v34 = vadd.f32 %v943_v25, %v2208_v21  ;;  %1509 = vtanh.f32 %v916_v33  ;;  %v919_v59 = vadd.f32 %v1317_v39, %v1971_v32  ;;  %v910_v7 = vpop.f32.mrb[31].mxu1 }
 0x42b   : > { %992 = vst [vmem:[%s2279_s4 + $0x30] sm:$0xff] %v976_v29  ;;  %v977_v52 = vadd.f32 %v961_v31, %v1917_v18  ;;  %1511 = vtanh.f32 %v908_v40  ;;  %v911_v17 = vadd.f32 %v1971_v32, %v910_v7 }
 0x42c   : > { %v1502_v15 = vpop.eup %1501  ;;  %990 = vst [vmem:[%s2279_s4 + $0x20] sm:$0xff] %v974_v61  ;;  %v975_v48 = vadd.f32 %v1518_v44, %v959_v34  ;;  %1513 = vtanh.f32 %v919_v59 }
 0x42d   : > { %v1504_v13 = vpop.eup %1503  ;;  %993 = vst [vmem:[%s2279_s4 + $0x38] sm:$0xff] %v977_v52  ;;  %v948_v21 = vmul.f32 0.0016666667, %v1502_v15  ;;  %1515 = vtanh.f32 %v911_v17 }
 0x42e   : > { %v1506_v45 = vpop.eup %1505  ;;  %991 = vst [vmem:[%s2279_s4 + $0x28] sm:$0xff] %v975_v48  ;;  %v946_v47 = vmul.f32 0.0016666667, %v1504_v13 }
 0x42f   : > { %v1508_v18 = vpop.eup %1507  ;;  %v964_v55 = vadd.f32 %v948_v21, %v2224_v54  ;;  %v949_v32 = vmul.f32 0.0016666667, %v1506_v45  ;;  %v1520_v54 = vld [vmem:[%s1829_s9 + $0x48] sm:$0xff] }
 0x430   : > { %v962_v8 = vadd.f32 %v946_v47, %v2221_v49  ;;  %v947_v57 = vmul.f32 0.0016666667, %v1508_v18 }
 0x431   : > { %v980_v50 = vadd.f32 %v964_v55, %v1934_v23  ;;  %v965_v10 = vadd.f32 %v949_v32, %v2227_v14 }
 0x432   : > { %v978_v9 = vadd.f32 %v1519_v51, %v962_v8  ;;  %v963_v56 = vadd.f32 %v947_v57, %v2230_v0 }
 0x433   : > { %996 = vst [vmem:[%s2279_s4 + $0x50] sm:$0xff] %v980_v50  ;;  %v981_v60 = vadd.f32 %v965_v10, %v1937_v24 }
 0x434   : > { %v1510_v58 = vpop.eup %1509  ;;  %994 = vst [vmem:[%s2279_s4 + $0x40] sm:$0xff] %v978_v9  ;;  %v979_v49 = vadd.f32 %v1520_v54, %v963_v56 }
 0x435   : > { %v1512_v53 = vpop.eup %1511  ;;  %997 = vst [vmem:[%s2279_s4 + $0x58] sm:$0xff] %v981_v60  ;;  %v952_v23 = vmul.f32 0.0016666667, %v1510_v58 }
 0x436   : > { %v1514_v62 = vpop.eup %1513  ;;  %995 = vst [vmem:[%s2279_s4 + $0x48] sm:$0xff] %v979_v49  ;;  %v950_v14 = vmul.f32 0.0016666667, %v1512_v53 }
 0x437   : > { %v1516_v0 = vpop.eup %1515  ;;  %v968_v63 = vadd.f32 %v952_v23, %v2244_v19  ;;  %v953_v24 = vmul.f32 0.0016666667, %v1514_v62 }
 0x438   : > { %v966_v16 = vadd.f32 %v950_v14, %v2241_v5  ;;  %v951_v1 = vmul.f32 0.0016666667, %v1516_v0  ;;  %v1524_v5 = vld [vmem:[%s1829_s9 + $0x68] sm:$0xff] }
 0x439   : > { %v984_v28 = vadd.f32 %v1521_v36, %v968_v63  ;;  %v969_v35 = vadd.f32 %v953_v24, %v2247_v20 }
 0x43a   : > { %v982_v46 = vadd.f32 %v1522_v11, %v966_v16  ;;  %v967_v19 = vadd.f32 %v951_v1, %v2250_v6 }
 0x43b   : > { %1000 = vst [vmem:[%s2279_s4 + $0x70] sm:$0xff] %v984_v28  ;;  %v985_v41 = vadd.f32 %v1523_v4, %v969_v35 }
 0x43c   : > { %998 = vst [vmem:[%s2279_s4 + $0x60] sm:$0xff] %v982_v46  ;;  %v983_v20 = vadd.f32 %v1524_v5, %v967_v19 }
 0x43d   : > { %1001 = vst [vmem:[%s2279_s4 + $0x78] sm:$0xff] %v985_v41 }
 0x43e   : > { %999 = vst [vmem:[%s2279_s4 + $0x68] sm:$0xff] %v983_v20 }
 0x43f   : > { %1596 = shalt.err (!%p1593_p7)
}
 0x440   : > { %s1597_s30 = scalar_lea.hbm %s2329_s16, 2048  ;;  %s1601_s8 = scalar_lea.hbm %s2382_s3, 4096 }
 0x441   : > { %p1598_p9 = scmp.ne.s32.totalorder %s2329_s16, %s1597_s30  ;;  %p1602_p5 = scmp.lt.u32.totalorder %s2329_s16, %s2382_s3 }
 0x442   : > { %p1603_p11 = scmp.lt.u32.totalorder %s1601_s8, %s1597_s30  ;;  %p1605_p4 = scmp.lt.u32.totalorder %s1597_s30, %s2329_s16 }
 0x443   : > { %p1599_p2 = pnand %p1598_p9, %p1775_p12 }
 0x444   : > { %p1604_p1 = por %p1603_p11, %p1602_p5 }
 0x445   : > { %p1600_p0 = pneg %p1599_p2 }
 0x446   : > { %p1606_p6 = por %p1605_p4, %p1604_p1 }
 0x448   : > { %p1607_p8 = pnand %p1606_p6, %p1600_p0 }
 0x44a   : > { %1610 = shalt.err (!%p1607_p8)
}
 0x44b   : > { %s1662_s20 = smov 128   ;;  %s1663_s4 = smov 8  }
 0x44c   : > { %1324 = dma.vmem_to_hbm [thread:$0]  (%p1775_p12), %s2331_s26, 2048, %s2329_s16, %s1003_s11, %s1662_s20, %s1662_s20, %s1663_s4  }
 0x44d PF: > { %s1031_s25 = sand.u32 1, %s1641_s12   ;;  %p2397_p10 = scmp.ne.s32.totalorder %s2387_s19, 0 }
 0x44e   : > { %p2398_p13 = scmp.ge.s32.totalorder %s1653_s15, 2  ;;  %s1032_s5 = scalar_lea.sflag [#allocation4], %s1031_s25 }
 0x450   : > { %p1335_p3 = pnand %p2398_p13, %p2397_p10 }
 0x452   : > { %1636 = dma.done.wait (!%p1335_p3), %s1032_s5, 2048  }
 0x453   : > { %1638 = vsyncadd (!%p1335_p3), %s1032_s5, 4294965248  ;;  %p17_p7 = scmp.ge.s32.totalorder %s1740_s24, 4   ;;  %s2399_s12 = smov %s1645_s13 }
 0x454   : > { %s2400_s13 = smov %s1649_s14  ;;  %s2401_s14 = smov %s1771_s17 }
 0x455   : > { %s2402_s15 = smov %s1740_s24  ;;  %19 = sbr.rel (!%p17_p7) target bundleno = 6 (0x6), region = 81 }
 0x45c   :  { %1037 = vsyncpa [#allocation3], 1 }
 0x45d   :  { %1039 = vsyncpa [#allocation3 + $0x1], 1 }
 0x45e   :  { %1040 = vsyncpa [#allocation6], 1 }
 0x45f   :  { %1041 = vsyncpa [#allocation4], 1 }
 0x460   :  { %1043 = vsyncpa [#allocation4 + $0x1], 1 }

</bundles_post_ra>
